<compile_context>
chip_gen: v5e
topology: v5e:2x2
jax: 0.10.0
libtpu: 0.0.40
codegen_flags: <defaults>
</compile_context>

<pallas_src>
import math
import jax
import jax.numpy as jnp
from jax.experimental import pallas as pl
from jax.experimental.pallas import tpu as pltpu


def make_transformer_block_kernel(seq_len, embed_dim, num_heads, tq, eps=1e-5):
    head_dim = embed_dim // num_heads

    def kernel(xq_ref, xf_ref,
               ln1w_ref, ln1b_ref,
               wq_ref, bq_ref, wkv_ref, bkv_ref,
               wo_ref, bo_ref,
               ln2w_ref, ln2b_ref,
               w1_ref, b1_ref, w2_ref, b2_ref,
               o_ref,
               qh_ref, kh_ref, vh_ref, attn_ref):
        qi = pl.program_id(1)                                 # query-tile index

        xq = xq_ref[0].astype(jnp.float32)                    # (TQ, E) query rows
        xf = xf_ref[0].astype(jnp.float32)                    # (S, E)  full sequence (for K/V)

        def layernorm(v, w_ref, b_ref):
            mu = jnp.mean(v, axis=-1, keepdims=True)
            var = jnp.mean((v - mu) ** 2, axis=-1, keepdims=True)
            return (v - mu) * jax.lax.rsqrt(var + eps) * w_ref[0] + b_ref[0]

        # ---- LayerNorm 1 (f32) ----
        nq = layernorm(xq, ln1w_ref, ln1b_ref)                # (TQ, E)
        nf = layernorm(xf, ln1w_ref, ln1b_ref)                # (S, E)

        # ---- Projections: bf16 MXU operands, f32 accumulation.  Q scale is folded in. ----
        q = jnp.dot(nq.astype(jnp.bfloat16), wq_ref[...],
                    preferred_element_type=jnp.float32) + bq_ref[0]      # (TQ, E)
        kv = jnp.dot(nf.astype(jnp.bfloat16), wkv_ref[...],
                     preferred_element_type=jnp.float32) + bkv_ref[0]    # (S, 2E)
        k = kv[:, :embed_dim]
        v = kv[:, embed_dim:]

        # ---- Split into heads once, into head-major bf16 VMEM scratch ----
        for h in range(num_heads):
            sl = slice(h * head_dim, (h + 1) * head_dim)
            qh_ref[h] = q[:, sl].astype(jnp.bfloat16)          # (TQ, Dh)
            kh_ref[h] = k[:, sl].astype(jnp.bfloat16)          # (S, Dh)
            vh_ref[h] = v[:, sl].astype(jnp.bfloat16)          # (S, Dh)

        # ---- Batched attention over all heads (no per-head matmul loop, no k.T) ----
        s = jnp.einsum("hqd,hkd->hqk", qh_ref[...], kh_ref[...],
                       preferred_element_type=jnp.float32)     # (H, TQ, S)

        row = jax.lax.broadcasted_iota(jnp.int32, (tq, seq_len), 0) + qi * tq
        col = jax.lax.broadcasted_iota(jnp.int32, (tq, seq_len), 1)
        bias = jnp.where(col <= row, 0.0, -1e30).astype(jnp.float32)   # additive causal mask
        s = s + bias[None, :, :]

        m = jnp.max(s, axis=-1, keepdims=True)
        e = jnp.exp(s - m)
        p = e * pl.reciprocal(jnp.sum(e, axis=-1, keepdims=True), approx=True)

        o = jnp.einsum("hqk,hkd->hqd", p.astype(jnp.bfloat16), vh_ref[...],
                       preferred_element_type=jnp.float32)     # (H, TQ, Dh)

        # Write head outputs straight into a (TQ, E) VMEM scratch slab (no concat).
        for h in range(num_heads):
            attn_ref[:, h * head_dim:(h + 1) * head_dim] = o[h]

        attn = jnp.dot(attn_ref[...].astype(jnp.bfloat16), wo_ref[...],
                       preferred_element_type=jnp.float32) + bo_ref[0]   # (TQ, E)

        # ---- residual 1 (dropout = identity in eval) ----
        x1 = xq + attn

        # ---- LayerNorm 2 (f32) ----
        n2 = layernorm(x1, ln2w_ref, ln2b_ref)

        # ---- FFN: Linear -> ReLU -> Linear (dropout = identity) ----
        h1 = jnp.dot(n2.astype(jnp.bfloat16), w1_ref[...],
                     preferred_element_type=jnp.float32) + b1_ref[0]     # (TQ, FF)
        h1 = jnp.maximum(h1, 0.0)
        ff = jnp.dot(h1.astype(jnp.bfloat16), w2_ref[...],
                     preferred_element_type=jnp.float32) + b2_ref[0]     # (TQ, E)

        # ---- residual 2 ----
        o_ref[0] = (x1 + ff).astype(o_ref.dtype)

    return kernel


def transformer_block(x, params, num_heads):
    """x: (B, S, E) float32.  params: dict of f32 pre-transposed weights (x @ W layout)."""
    B, S, E = x.shape
    assert E % num_heads == 0
    head_dim = E // num_heads
    scale = 1.0 / math.sqrt(head_dim)
    bf16 = jnp.bfloat16

    # Query-tile size: 128 for large S (lane/sublane friendly), whole sequence when S is small.
    TQ = 128 if S % 128 == 0 else S
    assert S % TQ == 0

    # Parameter prep in plain JAX: fold the softmax scale into the Q projection, cast all
    # matmul weights to bf16 (halves VMEM footprint), keep biases / LN params in f32.
    wq = (params["wq"] * scale).astype(bf16)
    bq = (params["bq"] * scale).astype(jnp.float32)
    wkv = params["wkv"].astype(bf16)
    bkv = params["bkv"].astype(jnp.float32)
    wo = params["wo"].astype(bf16)
    bo = params["bo"].astype(jnp.float32)
    w1 = params["w1"].astype(bf16)
    b1 = params["b1"].astype(jnp.float32)
    w2 = params["w2"].astype(bf16)
    b2 = params["b2"].astype(jnp.float32)

    weight_args = (params["ln1_w"], params["ln1_b"],
                   wq, bq, wkv, bkv, wo, bo,
                   params["ln2_w"], params["ln2_b"],
                   w1, b1, w2, b2)

    kernel = make_transformer_block_kernel(S, E, num_heads, TQ)

    def rep_spec(a):
        # Whole-array block, constant block index across the grid (Pallas skips re-DMA when the
        # block index does not change between steps).
        zeros = (0,) * a.ndim
        return pl.BlockSpec(a.shape, lambda b, q, _z=zeros: _z)

    in_specs = (
        [pl.BlockSpec((1, TQ, E), lambda b, q: (b, q, 0)),    # query tile of x
         pl.BlockSpec((1, S, E), lambda b, q: (b, 0, 0))]     # full x (K/V path)
        + [rep_spec(w) for w in weight_args]
    )
    out_spec = pl.BlockSpec((1, TQ, E), lambda b, q: (b, q, 0))

    scratch = [
        pltpu.VMEM((num_heads, TQ, head_dim), bf16),   # Q, head-major
        pltpu.VMEM((num_heads, S, head_dim), bf16),    # K, head-major
        pltpu.VMEM((num_heads, S, head_dim), bf16),    # V, head-major
        pltpu.VMEM((TQ, E), jnp.float32),              # merged attention output
    ]

    return pl.pallas_call(
        kernel,
        out_shape=jax.ShapeDtypeStruct((B, S, E), x.dtype),
        grid_spec=pltpu.PrefetchScalarGridSpec(
            num_scalar_prefetch=0,
            grid=(B, S // TQ),
            in_specs=in_specs,
            out_specs=out_spec,
            scratch_shapes=scratch,
        ),
        compiler_params=pltpu.CompilerParams(
            dimension_semantics=("parallel", "parallel"),
            vmem_limit_bytes=64 * 1024 * 1024),
    )(x, x, *weight_args)


def init_params(key, embed_dim, ff_dim):
    """Deterministic synthetic parameters; weights stored pre-transposed for x @ W."""
    ks = jax.random.split(key, 10)
    s = 0.05
    E = embed_dim
    return {
        "ln1_w": jnp.ones((1, E), jnp.float32),
        "ln1_b": jnp.zeros((1, E), jnp.float32),
        "wq": s * jax.random.normal(ks[0], (E, E), jnp.float32),
        "bq": s * jax.random.normal(ks[1], (1, E), jnp.float32),
        "wkv": s * jax.random.normal(ks[2], (E, 2 * E), jnp.float32),
        "bkv": s * jax.random.normal(ks[3], (1, 2 * E), jnp.float32),
        "wo": s * jax.random.normal(ks[4], (E, E), jnp.float32),
        "bo": s * jax.random.normal(ks[5], (1, E), jnp.float32),
        "ln2_w": jnp.ones((1, E), jnp.float32),
        "ln2_b": jnp.zeros((1, E), jnp.float32),
        "w1": s * jax.random.normal(ks[6], (E, ff_dim), jnp.float32),
        "b1": s * jax.random.normal(ks[7], (1, ff_dim), jnp.float32),
        "w2": s * jax.random.normal(ks[8], (ff_dim, E), jnp.float32),
        "b2": s * jax.random.normal(ks[9], (1, E), jnp.float32),
    }


def reference_block(x, p, num_heads, eps=1e-5):
    """Pure-JAX f32 reference mirroring the PyTorch eval-mode forward."""
    B, S, E = x.shape
    Dh = E // num_heads

    def ln(v, w, b):
        mu = jnp.mean(v, -1, keepdims=True)
        var = jnp.mean((v - mu) ** 2, -1, keepdims=True)
        return (v - mu) / jnp.sqrt(var + eps) * w[0] + b[0]

    nx = ln(x, p["ln1_w"], p["ln1_b"])
    q = nx @ p["wq"] + p["bq"][0]
    kv = nx @ p["wkv"] + p["bkv"][0]
    k, v = kv[..., :E], kv[..., E:]
    q = q.reshape(B, S, num_heads, Dh).transpose(0, 2, 1, 3) / math.sqrt(Dh)
    k = k.reshape(B, S, num_heads, Dh).transpose(0, 2, 1, 3)
    v = v.reshape(B, S, num_heads, Dh).transpose(0, 2, 1, 3)
    s = jnp.einsum("bhqd,bhkd->bhqk", q, k)
    mask = jnp.tril(jnp.ones((S, S), bool))
    s = jnp.where(mask, s, -jnp.inf)
    pattn = jax.nn.softmax(s, axis=-1)
    a = jnp.einsum("bhqk,bhkd->bhqd", pattn, v).transpose(0, 2, 1, 3).reshape(B, S, E)
    a = a @ p["wo"] + p["bo"][0]
    x = x + a
    nx2 = ln(x, p["ln2_w"], p["ln2_b"])
    h1 = jax.nn.relu(nx2 @ p["w1"] + p["b1"][0])
    ff = h1 @ p["w2"] + p["b2"][0]
    return x + ff


if __name__ == "__main__":
    # Small but lane-dense config: embed dim is a multiple of 128 so stores stay unmasked.
    B, S, E, H = 2, 8, 128, 4
    FF = 4 * E

    key = jax.random.PRNGKey(0)
    kx, kp = jax.random.split(key)
    x = jax.random.normal(kx, (B, S, E), jnp.float32)
    params = init_params(kp, E, FF)

    out = transformer_block(x, params, num_heads=H)
    out = jax.block_until_ready(out)

    ref = reference_block(x, params, num_heads=H)
    assert out.shape == (B, S, E)
    # bf16 MXU operands + approximate reciprocal => loosened tolerance vs the f32 reference.
    err = float(jnp.max(jnp.abs(out - ref)))
    assert jnp.allclose(out, ref, atol=5e-2, rtol=5e-2), f"max abs err {err}"

    # TODO(synk): dropout layers are treated as identity (eval-mode forward); training-mode
    # dropout would need pltpu.prng_seed / prng_random_bits inside the kernel.
    print("KERNEL_OK")
</pallas_src>

<mosaic_0001>
module attributes {stable_mosaic.version = 11 : i64} {
  func.func @kernel(%arg0: i32, %arg1: i32, %arg2: memref<1x8x128xf32, #tpu.memory_space<vmem>>, %arg3: memref<1x8x128xf32, #tpu.memory_space<vmem>>, %arg4: memref<1x128xf32, #tpu.memory_space<vmem>>, %arg5: memref<1x128xf32, #tpu.memory_space<vmem>>, %arg6: memref<128x128xbf16, #tpu.memory_space<vmem>>, %arg7: memref<1x128xf32, #tpu.memory_space<vmem>>, %arg8: memref<128x256xbf16, #tpu.memory_space<vmem>>, %arg9: memref<1x256xf32, #tpu.memory_space<vmem>>, %arg10: memref<128x128xbf16, #tpu.memory_space<vmem>>, %arg11: memref<1x128xf32, #tpu.memory_space<vmem>>, %arg12: memref<1x128xf32, #tpu.memory_space<vmem>>, %arg13: memref<1x128xf32, #tpu.memory_space<vmem>>, %arg14: memref<128x512xbf16, #tpu.memory_space<vmem>>, %arg15: memref<1x512xf32, #tpu.memory_space<vmem>>, %arg16: memref<512x128xbf16, #tpu.memory_space<vmem>>, %arg17: memref<1x128xf32, #tpu.memory_space<vmem>>, %arg18: memref<1x8x128xf32, #tpu.memory_space<vmem>>, %arg19: memref<4x8x32xbf16, #tpu.memory_space<vmem>>, %arg20: memref<4x8x32xbf16, #tpu.memory_space<vmem>>, %arg21: memref<4x8x32xbf16, #tpu.memory_space<vmem>>, %arg22: memref<8x128xf32, #tpu.memory_space<vmem>>) attributes {dimension_semantics = [#tpu.dimension_semantics<parallel>, #tpu.dimension_semantics<parallel>], iteration_bounds = array<i64: 2, 1>, scalar_prefetch = 0 : i64, scratch_operands = 4 : i64, tpu.core_type = #tpu.core_type<tc>, window_params = [{transform_indices = @transform_0, window_bounds = array<i64: 1, 8, 128>}, {transform_indices = @transform_1, window_bounds = array<i64: 1, 8, 128>}, {pipeline_mode = #tpu.pipeline_mode<synchronous>, transform_indices = @transform_2, window_bounds = array<i64: 1, 128>}, {pipeline_mode = #tpu.pipeline_mode<synchronous>, transform_indices = @transform_3, window_bounds = array<i64: 1, 128>}, {pipeline_mode = #tpu.pipeline_mode<synchronous>, transform_indices = @transform_4, window_bounds = array<i64: 128, 128>}, {pipeline_mode = #tpu.pipeline_mode<synchronous>, transform_indices = @transform_5, window_bounds = array<i64: 1, 128>}, {pipeline_mode = #tpu.pipeline_mode<synchronous>, transform_indices = @transform_6, window_bounds = array<i64: 128, 256>}, {pipeline_mode = #tpu.pipeline_mode<synchronous>, transform_indices = @transform_7, window_bounds = array<i64: 1, 256>}, {pipeline_mode = #tpu.pipeline_mode<synchronous>, transform_indices = @transform_8, window_bounds = array<i64: 128, 128>}, {pipeline_mode = #tpu.pipeline_mode<synchronous>, transform_indices = @transform_9, window_bounds = array<i64: 1, 128>}, {pipeline_mode = #tpu.pipeline_mode<synchronous>, transform_indices = @transform_10, window_bounds = array<i64: 1, 128>}, {pipeline_mode = #tpu.pipeline_mode<synchronous>, transform_indices = @transform_11, window_bounds = array<i64: 1, 128>}, {pipeline_mode = #tpu.pipeline_mode<synchronous>, transform_indices = @transform_12, window_bounds = array<i64: 128, 512>}, {pipeline_mode = #tpu.pipeline_mode<synchronous>, transform_indices = @transform_13, window_bounds = array<i64: 1, 512>}, {pipeline_mode = #tpu.pipeline_mode<synchronous>, transform_indices = @transform_14, window_bounds = array<i64: 512, 128>}, {pipeline_mode = #tpu.pipeline_mode<synchronous>, transform_indices = @transform_15, window_bounds = array<i64: 1, 128>}, {transform_indices = @transform_16, window_bounds = array<i64: 1, 8, 128>}]} {
    %c0 = arith.constant 0 : index
    %c0_0 = arith.constant 0 : index
    %c0_1 = arith.constant 0 : index
    %0 = vector.load %arg2[%c0, %c0_0, %c0_1] : memref<1x8x128xf32, #tpu.memory_space<vmem>>, vector<1x8x128xf32>
    %1 = vector.shape_cast %0 : vector<1x8x128xf32> to vector<8x128xf32>
    %c0_2 = arith.constant 0 : index
    %c0_3 = arith.constant 0 : index
    %c0_4 = arith.constant 0 : index
    %2 = vector.load %arg3[%c0_2, %c0_3, %c0_4] : memref<1x8x128xf32, #tpu.memory_space<vmem>>, vector<1x8x128xf32>
    %3 = vector.shape_cast %2 : vector<1x8x128xf32> to vector<8x128xf32>
    %cst = arith.constant dense<0.000000e+00> : vector<8xf32>
    %4 = vector.multi_reduction <add>, %1, %cst [1] : vector<8x128xf32> to vector<8xf32>
    %5 = vector.shape_cast %4 : vector<8xf32> to vector<8x1xf32>
    %cst_5 = arith.constant 1.280000e+02 : f32
    %6 = vector.broadcast %cst_5 : f32 to vector<8x1xf32>
    %7 = arith.divf %5, %6 : vector<8x1xf32>
    %8 = vector.broadcast %7 : vector<8x1xf32> to vector<8x128xf32>
    %9 = arith.subf %1, %8 : vector<8x128xf32>
    %10 = arith.mulf %9, %9 : vector<8x128xf32>
    %cst_6 = arith.constant dense<0.000000e+00> : vector<8xf32>
    %11 = vector.multi_reduction <add>, %10, %cst_6 [1] : vector<8x128xf32> to vector<8xf32>
    %12 = vector.shape_cast %11 : vector<8xf32> to vector<8x1xf32>
    %cst_7 = arith.constant 1.280000e+02 : f32
    %13 = vector.broadcast %cst_7 : f32 to vector<8x1xf32>
    %14 = arith.divf %12, %13 : vector<8x1xf32>
    %15 = vector.broadcast %7 : vector<8x1xf32> to vector<8x128xf32>
    %16 = arith.subf %1, %15 : vector<8x128xf32>
    %cst_8 = arith.constant 9.99999974E-6 : f32
    %17 = vector.broadcast %cst_8 : f32 to vector<8x1xf32>
    %18 = arith.addf %14, %17 : vector<8x1xf32>
    %19 = math.rsqrt %18 : vector<8x1xf32>
    %20 = vector.broadcast %19 : vector<8x1xf32> to vector<8x128xf32>
    %21 = arith.mulf %16, %20 : vector<8x128xf32>
    %c0_9 = arith.constant 0 : index
    %c0_10 = arith.constant 0 : index
    %22 = vector.load %arg4[%c0_9, %c0_10] : memref<1x128xf32, #tpu.memory_space<vmem>>, vector<1x128xf32>
    %23 = vector.shape_cast %22 : vector<1x128xf32> to vector<128xf32>
    %24 = vector.shape_cast %23 : vector<128xf32> to vector<1x128xf32>
    %25 = vector.broadcast %24 : vector<1x128xf32> to vector<8x128xf32>
    %26 = arith.mulf %21, %25 : vector<8x128xf32>
    %c0_11 = arith.constant 0 : index
    %c0_12 = arith.constant 0 : index
    %27 = vector.load %arg5[%c0_11, %c0_12] : memref<1x128xf32, #tpu.memory_space<vmem>>, vector<1x128xf32>
    %28 = vector.shape_cast %27 : vector<1x128xf32> to vector<128xf32>
    %29 = vector.shape_cast %28 : vector<128xf32> to vector<1x128xf32>
    %30 = vector.broadcast %29 : vector<1x128xf32> to vector<8x128xf32>
    %31 = arith.addf %26, %30 : vector<8x128xf32>
    %cst_13 = arith.constant dense<0.000000e+00> : vector<8xf32>
    %32 = vector.multi_reduction <add>, %3, %cst_13 [1] : vector<8x128xf32> to vector<8xf32>
    %33 = vector.shape_cast %32 : vector<8xf32> to vector<8x1xf32>
    %cst_14 = arith.constant 1.280000e+02 : f32
    %34 = vector.broadcast %cst_14 : f32 to vector<8x1xf32>
    %35 = arith.divf %33, %34 : vector<8x1xf32>
    %36 = vector.broadcast %35 : vector<8x1xf32> to vector<8x128xf32>
    %37 = arith.subf %3, %36 : vector<8x128xf32>
    %38 = arith.mulf %37, %37 : vector<8x128xf32>
    %cst_15 = arith.constant dense<0.000000e+00> : vector<8xf32>
    %39 = vector.multi_reduction <add>, %38, %cst_15 [1] : vector<8x128xf32> to vector<8xf32>
    %40 = vector.shape_cast %39 : vector<8xf32> to vector<8x1xf32>
    %cst_16 = arith.constant 1.280000e+02 : f32
    %41 = vector.broadcast %cst_16 : f32 to vector<8x1xf32>
    %42 = arith.divf %40, %41 : vector<8x1xf32>
    %43 = vector.broadcast %35 : vector<8x1xf32> to vector<8x128xf32>
    %44 = arith.subf %3, %43 : vector<8x128xf32>
    %cst_17 = arith.constant 9.99999974E-6 : f32
    %45 = vector.broadcast %cst_17 : f32 to vector<8x1xf32>
    %46 = arith.addf %42, %45 : vector<8x1xf32>
    %47 = math.rsqrt %46 : vector<8x1xf32>
    %48 = vector.broadcast %47 : vector<8x1xf32> to vector<8x128xf32>
    %49 = arith.mulf %44, %48 : vector<8x128xf32>
    %c0_18 = arith.constant 0 : index
    %c0_19 = arith.constant 0 : index
    %50 = vector.load %arg4[%c0_18, %c0_19] : memref<1x128xf32, #tpu.memory_space<vmem>>, vector<1x128xf32>
    %51 = vector.shape_cast %50 : vector<1x128xf32> to vector<128xf32>
    %52 = vector.shape_cast %51 : vector<128xf32> to vector<1x128xf32>
    %53 = vector.broadcast %52 : vector<1x128xf32> to vector<8x128xf32>
    %54 = arith.mulf %49, %53 : vector<8x128xf32>
    %c0_20 = arith.constant 0 : index
    %c0_21 = arith.constant 0 : index
    %55 = vector.load %arg5[%c0_20, %c0_21] : memref<1x128xf32, #tpu.memory_space<vmem>>, vector<1x128xf32>
    %56 = vector.shape_cast %55 : vector<1x128xf32> to vector<128xf32>
    %57 = vector.shape_cast %56 : vector<128xf32> to vector<1x128xf32>
    %58 = vector.broadcast %57 : vector<1x128xf32> to vector<8x128xf32>
    %59 = arith.addf %54, %58 : vector<8x128xf32>
    %60 = arith.truncf %31 : vector<8x128xf32> to vector<8x128xbf16>
    %c0_22 = arith.constant 0 : index
    %c0_23 = arith.constant 0 : index
    %61 = vector.load %arg6[%c0_22, %c0_23] : memref<128x128xbf16, #tpu.memory_space<vmem>>, vector<128x128xbf16>
    %cst_24 = arith.constant dense<0.000000e+00> : vector<8x128xf32>
    %62 = tpu.matmul %60, %61, %cst_24 {dimension_numbers = #tpu.dot_dimension_numbers<[1], [0], [0], [1], [0, 0, 1, 1], [], []>} : vector<8x128xbf16>, vector<128x128xbf16>, vector<8x128xf32> -> vector<8x128xf32>
    %c0_25 = arith.constant 0 : index
    %c0_26 = arith.constant 0 : index
    %63 = vector.load %arg7[%c0_25, %c0_26] : memref<1x128xf32, #tpu.memory_space<vmem>>, vector<1x128xf32>
    %64 = vector.shape_cast %63 : vector<1x128xf32> to vector<128xf32>
    %65 = vector.shape_cast %64 : vector<128xf32> to vector<1x128xf32>
    %66 = vector.broadcast %65 : vector<1x128xf32> to vector<8x128xf32>
    %67 = arith.addf %62, %66 : vector<8x128xf32>
    %68 = arith.truncf %59 : vector<8x128xf32> to vector<8x128xbf16>
    %c0_27 = arith.constant 0 : index
    %c0_28 = arith.constant 0 : index
    %69 = vector.load %arg8[%c0_27, %c0_28] : memref<128x256xbf16, #tpu.memory_space<vmem>>, vector<128x256xbf16>
    %cst_29 = arith.constant dense<0.000000e+00> : vector<8x256xf32>
    %70 = tpu.matmul %68, %69, %cst_29 {dimension_numbers = #tpu.dot_dimension_numbers<[1], [0], [0], [1], [0, 0, 1, 1], [], []>} : vector<8x128xbf16>, vector<128x256xbf16>, vector<8x256xf32> -> vector<8x256xf32>
    %c0_30 = arith.constant 0 : index
    %c0_31 = arith.constant 0 : index
    %71 = vector.load %arg9[%c0_30, %c0_31] : memref<1x256xf32, #tpu.memory_space<vmem>>, vector<1x256xf32>
    %72 = vector.shape_cast %71 : vector<1x256xf32> to vector<256xf32>
    %73 = vector.shape_cast %72 : vector<256xf32> to vector<1x256xf32>
    %74 = vector.broadcast %73 : vector<1x256xf32> to vector<8x256xf32>
    %75 = arith.addf %70, %74 : vector<8x256xf32>
    %76 = vector.extract_strided_slice %75 {offsets = [0, 0], sizes = [8, 128], strides = [1, 1]} : vector<8x256xf32> to vector<8x128xf32>
    %77 = vector.extract_strided_slice %75 {offsets = [0, 128], sizes = [8, 128], strides = [1, 1]} : vector<8x256xf32> to vector<8x128xf32>
    %78 = vector.extract_strided_slice %67 {offsets = [0, 0], sizes = [8, 32], strides = [1, 1]} : vector<8x128xf32> to vector<8x32xf32>
    %79 = arith.truncf %78 : vector<8x32xf32> to vector<8x32xbf16>
    %c0_32 = arith.constant 0 : index
    %c0_33 = arith.constant 0 : index
    %c0_34 = arith.constant 0 : index
    %80 = vector.load %arg19[%c0_32, %c0_33, %c0_34] : memref<4x8x32xbf16, #tpu.memory_space<vmem>>, vector<1x8x32xbf16>
    %81 = vector.shape_cast %80 : vector<1x8x32xbf16> to vector<8x32xbf16>
    %82 = vector.shape_cast %79 : vector<8x32xbf16> to vector<1x8x32xbf16>
    tpu.vector_store %arg19[%c0_32, %c0_33, %c0_34], %82 {strides = array<i32>} : memref<4x8x32xbf16, #tpu.memory_space<vmem>>, vector<1x8x32xbf16>,
    %83 = vector.extract_strided_slice %76 {offsets = [0, 0], sizes = [8, 32], strides = [1, 1]} : vector<8x128xf32> to vector<8x32xf32>
    %84 = arith.truncf %83 : vector<8x32xf32> to vector<8x32xbf16>
    %c0_35 = arith.constant 0 : index
    %c0_36 = arith.constant 0 : index
    %c0_37 = arith.constant 0 : index
    %85 = vector.load %arg20[%c0_35, %c0_36, %c0_37] : memref<4x8x32xbf16, #tpu.memory_space<vmem>>, vector<1x8x32xbf16>
    %86 = vector.shape_cast %85 : vector<1x8x32xbf16> to vector<8x32xbf16>
    %87 = vector.shape_cast %84 : vector<8x32xbf16> to vector<1x8x32xbf16>
    tpu.vector_store %arg20[%c0_35, %c0_36, %c0_37], %87 {strides = array<i32>} : memref<4x8x32xbf16, #tpu.memory_space<vmem>>, vector<1x8x32xbf16>,
    %88 = vector.extract_strided_slice %77 {offsets = [0, 0], sizes = [8, 32], strides = [1, 1]} : vector<8x128xf32> to vector<8x32xf32>
    %89 = arith.truncf %88 : vector<8x32xf32> to vector<8x32xbf16>
    %c0_38 = arith.constant 0 : index
    %c0_39 = arith.constant 0 : index
    %c0_40 = arith.constant 0 : index
    %90 = vector.load %arg21[%c0_38, %c0_39, %c0_40] : memref<4x8x32xbf16, #tpu.memory_space<vmem>>, vector<1x8x32xbf16>
    %91 = vector.shape_cast %90 : vector<1x8x32xbf16> to vector<8x32xbf16>
    %92 = vector.shape_cast %89 : vector<8x32xbf16> to vector<1x8x32xbf16>
    tpu.vector_store %arg21[%c0_38, %c0_39, %c0_40], %92 {strides = array<i32>} : memref<4x8x32xbf16, #tpu.memory_space<vmem>>, vector<1x8x32xbf16>,
    %93 = vector.extract_strided_slice %67 {offsets = [0, 32], sizes = [8, 32], strides = [1, 1]} : vector<8x128xf32> to vector<8x32xf32>
    %94 = arith.truncf %93 : vector<8x32xf32> to vector<8x32xbf16>
    %c1 = arith.constant 1 : index
    %c0_41 = arith.constant 0 : index
    %c0_42 = arith.constant 0 : index
    %95 = vector.load %arg19[%c1, %c0_41, %c0_42] : memref<4x8x32xbf16, #tpu.memory_space<vmem>>, vector<1x8x32xbf16>
    %96 = vector.shape_cast %95 : vector<1x8x32xbf16> to vector<8x32xbf16>
    %97 = vector.shape_cast %94 : vector<8x32xbf16> to vector<1x8x32xbf16>
    tpu.vector_store %arg19[%c1, %c0_41, %c0_42], %97 {strides = array<i32>} : memref<4x8x32xbf16, #tpu.memory_space<vmem>>, vector<1x8x32xbf16>,
    %98 = vector.extract_strided_slice %76 {offsets = [0, 32], sizes = [8, 32], strides = [1, 1]} : vector<8x128xf32> to vector<8x32xf32>
    %99 = arith.truncf %98 : vector<8x32xf32> to vector<8x32xbf16>
    %c1_43 = arith.constant 1 : index
    %c0_44 = arith.constant 0 : index
    %c0_45 = arith.constant 0 : index
    %100 = vector.load %arg20[%c1_43, %c0_44, %c0_45] : memref<4x8x32xbf16, #tpu.memory_space<vmem>>, vector<1x8x32xbf16>
    %101 = vector.shape_cast %100 : vector<1x8x32xbf16> to vector<8x32xbf16>
    %102 = vector.shape_cast %99 : vector<8x32xbf16> to vector<1x8x32xbf16>
    tpu.vector_store %arg20[%c1_43, %c0_44, %c0_45], %102 {strides = array<i32>} : memref<4x8x32xbf16, #tpu.memory_space<vmem>>, vector<1x8x32xbf16>,
    %103 = vector.extract_strided_slice %77 {offsets = [0, 32], sizes = [8, 32], strides = [1, 1]} : vector<8x128xf32> to vector<8x32xf32>
    %104 = arith.truncf %103 : vector<8x32xf32> to vector<8x32xbf16>
    %c1_46 = arith.constant 1 : index
    %c0_47 = arith.constant 0 : index
    %c0_48 = arith.constant 0 : index
    %105 = vector.load %arg21[%c1_46, %c0_47, %c0_48] : memref<4x8x32xbf16, #tpu.memory_space<vmem>>, vector<1x8x32xbf16>
    %106 = vector.shape_cast %105 : vector<1x8x32xbf16> to vector<8x32xbf16>
    %107 = vector.shape_cast %104 : vector<8x32xbf16> to vector<1x8x32xbf16>
    tpu.vector_store %arg21[%c1_46, %c0_47, %c0_48], %107 {strides = array<i32>} : memref<4x8x32xbf16, #tpu.memory_space<vmem>>, vector<1x8x32xbf16>,
    %108 = vector.extract_strided_slice %67 {offsets = [0, 64], sizes = [8, 32], strides = [1, 1]} : vector<8x128xf32> to vector<8x32xf32>
    %109 = arith.truncf %108 : vector<8x32xf32> to vector<8x32xbf16>
    %c2 = arith.constant 2 : index
    %c0_49 = arith.constant 0 : index
    %c0_50 = arith.constant 0 : index
    %110 = vector.load %arg19[%c2, %c0_49, %c0_50] : memref<4x8x32xbf16, #tpu.memory_space<vmem>>, vector<1x8x32xbf16>
    %111 = vector.shape_cast %110 : vector<1x8x32xbf16> to vector<8x32xbf16>
    %112 = vector.shape_cast %109 : vector<8x32xbf16> to vector<1x8x32xbf16>
    tpu.vector_store %arg19[%c2, %c0_49, %c0_50], %112 {strides = array<i32>} : memref<4x8x32xbf16, #tpu.memory_space<vmem>>, vector<1x8x32xbf16>,
    %113 = vector.extract_strided_slice %76 {offsets = [0, 64], sizes = [8, 32], strides = [1, 1]} : vector<8x128xf32> to vector<8x32xf32>
    %114 = arith.truncf %113 : vector<8x32xf32> to vector<8x32xbf16>
    %c2_51 = arith.constant 2 : index
    %c0_52 = arith.constant 0 : index
    %c0_53 = arith.constant 0 : index
    %115 = vector.load %arg20[%c2_51, %c0_52, %c0_53] : memref<4x8x32xbf16, #tpu.memory_space<vmem>>, vector<1x8x32xbf16>
    %116 = vector.shape_cast %115 : vector<1x8x32xbf16> to vector<8x32xbf16>
    %117 = vector.shape_cast %114 : vector<8x32xbf16> to vector<1x8x32xbf16>
    tpu.vector_store %arg20[%c2_51, %c0_52, %c0_53], %117 {strides = array<i32>} : memref<4x8x32xbf16, #tpu.memory_space<vmem>>, vector<1x8x32xbf16>,
    %118 = vector.extract_strided_slice %77 {offsets = [0, 64], sizes = [8, 32], strides = [1, 1]} : vector<8x128xf32> to vector<8x32xf32>
    %119 = arith.truncf %118 : vector<8x32xf32> to vector<8x32xbf16>
    %c2_54 = arith.constant 2 : index
    %c0_55 = arith.constant 0 : index
    %c0_56 = arith.constant 0 : index
    %120 = vector.load %arg21[%c2_54, %c0_55, %c0_56] : memref<4x8x32xbf16, #tpu.memory_space<vmem>>, vector<1x8x32xbf16>
    %121 = vector.shape_cast %120 : vector<1x8x32xbf16> to vector<8x32xbf16>
    %122 = vector.shape_cast %119 : vector<8x32xbf16> to vector<1x8x32xbf16>
    tpu.vector_store %arg21[%c2_54, %c0_55, %c0_56], %122 {strides = array<i32>} : memref<4x8x32xbf16, #tpu.memory_space<vmem>>, vector<1x8x32xbf16>,
    %123 = vector.extract_strided_slice %67 {offsets = [0, 96], sizes = [8, 32], strides = [1, 1]} : vector<8x128xf32> to vector<8x32xf32>
    %124 = arith.truncf %123 : vector<8x32xf32> to vector<8x32xbf16>
    %c3 = arith.constant 3 : index
    %c0_57 = arith.constant 0 : index
    %c0_58 = arith.constant 0 : index
    %125 = vector.load %arg19[%c3, %c0_57, %c0_58] : memref<4x8x32xbf16, #tpu.memory_space<vmem>>, vector<1x8x32xbf16>
    %126 = vector.shape_cast %125 : vector<1x8x32xbf16> to vector<8x32xbf16>
    %127 = vector.shape_cast %124 : vector<8x32xbf16> to vector<1x8x32xbf16>
    tpu.vector_store %arg19[%c3, %c0_57, %c0_58], %127 {strides = array<i32>} : memref<4x8x32xbf16, #tpu.memory_space<vmem>>, vector<1x8x32xbf16>,
    %128 = vector.extract_strided_slice %76 {offsets = [0, 96], sizes = [8, 32], strides = [1, 1]} : vector<8x128xf32> to vector<8x32xf32>
    %129 = arith.truncf %128 : vector<8x32xf32> to vector<8x32xbf16>
    %c3_59 = arith.constant 3 : index
    %c0_60 = arith.constant 0 : index
    %c0_61 = arith.constant 0 : index
    %130 = vector.load %arg20[%c3_59, %c0_60, %c0_61] : memref<4x8x32xbf16, #tpu.memory_space<vmem>>, vector<1x8x32xbf16>
    %131 = vector.shape_cast %130 : vector<1x8x32xbf16> to vector<8x32xbf16>
    %132 = vector.shape_cast %129 : vector<8x32xbf16> to vector<1x8x32xbf16>
    tpu.vector_store %arg20[%c3_59, %c0_60, %c0_61], %132 {strides = array<i32>} : memref<4x8x32xbf16, #tpu.memory_space<vmem>>, vector<1x8x32xbf16>,
    %133 = vector.extract_strided_slice %77 {offsets = [0, 96], sizes = [8, 32], strides = [1, 1]} : vector<8x128xf32> to vector<8x32xf32>
    %134 = arith.truncf %133 : vector<8x32xf32> to vector<8x32xbf16>
    %c3_62 = arith.constant 3 : index
    %c0_63 = arith.constant 0 : index
    %c0_64 = arith.constant 0 : index
    %135 = vector.load %arg21[%c3_62, %c0_63, %c0_64] : memref<4x8x32xbf16, #tpu.memory_space<vmem>>, vector<1x8x32xbf16>
    %136 = vector.shape_cast %135 : vector<1x8x32xbf16> to vector<8x32xbf16>
    %137 = vector.shape_cast %134 : vector<8x32xbf16> to vector<1x8x32xbf16>
    tpu.vector_store %arg21[%c3_62, %c0_63, %c0_64], %137 {strides = array<i32>} : memref<4x8x32xbf16, #tpu.memory_space<vmem>>, vector<1x8x32xbf16>,
    %c0_65 = arith.constant 0 : index
    %c0_66 = arith.constant 0 : index
    %c0_67 = arith.constant 0 : index
    %138 = vector.load %arg19[%c0_65, %c0_66, %c0_67] : memref<4x8x32xbf16, #tpu.memory_space<vmem>>, vector<4x8x32xbf16>
    %c0_68 = arith.constant 0 : index
    %c0_69 = arith.constant 0 : index
    %c0_70 = arith.constant 0 : index
    %139 = vector.load %arg20[%c0_68, %c0_69, %c0_70] : memref<4x8x32xbf16, #tpu.memory_space<vmem>>, vector<4x8x32xbf16>
    "tpu.trace_start"() <{level = 10 : i32, message = "hqd,hkd->hqk"}> : () -> ()
    %cst_71 = arith.constant dense<0.000000e+00> : vector<4x8x8xf32>
    %140 = tpu.matmul %138, %139, %cst_71 {dimension_numbers = #tpu.dot_dimension_numbers<[2], [2], [1], [1], [0, 0, 0, 1, 1, 1], [0], [0]>} : vector<4x8x32xbf16>, vector<4x8x32xbf16>, vector<4x8x8xf32> -> vector<4x8x8xf32>
    "tpu.trace_stop"() : () -> ()
    %141 = tpu.iota {dimensions = array<i32: 0>} : vector<8x8xi32>
    %c8_i32 = arith.constant 8 : i32
    %142 = arith.muli %arg1, %c8_i32 : i32
    %143 = vector.broadcast %142 : i32 to vector<8x8xi32>
    %144 = arith.addi %141, %143 : vector<8x8xi32>
    %145 = tpu.iota {dimensions = array<i32: 1>} : vector<8x8xi32>
    %146 = arith.cmpi sle, %145, %144 : vector<8x8xi32>
    %cst_72 = arith.constant 0.000000e+00 : f32
    %cst_73 = arith.constant -1.000000e+30 : f32
    %147 = vector.broadcast %cst_72 : f32 to vector<8x8xf32>
    %148 = vector.broadcast %cst_73 : f32 to vector<8x8xf32>
    %149 = arith.select %146, %147, %148 : vector<8x8xi1>, vector<8x8xf32>
    %150 = vector.shape_cast %149 : vector<8x8xf32> to vector<1x8x8xf32>
    %151 = vector.broadcast %150 : vector<1x8x8xf32> to vector<4x8x8xf32>
    %152 = arith.addf %140, %151 : vector<4x8x8xf32>
    %cst_74 = arith.constant dense<0xFF800000> : vector<4x8xf32>
    %153 = vector.multi_reduction <maximumf>, %152, %cst_74 [2] : vector<4x8x8xf32> to vector<4x8xf32>
    %154 = vector.shape_cast %153 : vector<4x8xf32> to vector<4x8x1xf32>
    %155 = vector.broadcast %154 : vector<4x8x1xf32> to vector<4x8x8xf32>
    %156 = arith.subf %152, %155 : vector<4x8x8xf32>
    %157 = math.exp %156 : vector<4x8x8xf32>
    %cst_75 = arith.constant dense<0.000000e+00> : vector<4x8xf32>
    %158 = vector.multi_reduction <add>, %157, %cst_75 [2] : vector<4x8x8xf32> to vector<4x8xf32>
    %159 = vector.shape_cast %158 : vector<4x8xf32> to vector<4x8x1xf32>
    %160 = tpu.reciprocal %159 {approx = true} : vector<4x8x1xf32> -> vector<4x8x1xf32>
    %161 = vector.broadcast %160 : vector<4x8x1xf32> to vector<4x8x8xf32>
    %162 = arith.mulf %157, %161 : vector<4x8x8xf32>
    %163 = arith.truncf %162 : vector<4x8x8xf32> to vector<4x8x8xbf16>
    %c0_76 = arith.constant 0 : index
    %c0_77 = arith.constant 0 : index
    %c0_78 = arith.constant 0 : index
    %164 = vector.load %arg21[%c0_76, %c0_77, %c0_78] : memref<4x8x32xbf16, #tpu.memory_space<vmem>>, vector<4x8x32xbf16>
    "tpu.trace_start"() <{level = 10 : i32, message = "hqk,hkd->hqd"}> : () -> ()
    %cst_79 = arith.constant dense<0.000000e+00> : vector<4x8x32xf32>
    %165 = tpu.matmul %163, %164, %cst_79 {dimension_numbers = #tpu.dot_dimension_numbers<[2], [1], [1], [2], [0, 0, 0, 1, 1, 2], [0], [0]>} : vector<4x8x8xbf16>, vector<4x8x32xbf16>, vector<4x8x32xf32> -> vector<4x8x32xf32>
    "tpu.trace_stop"() : () -> ()
    %166 = vector.extract_strided_slice %165 {offsets = [0, 0, 0], sizes = [1, 8, 32], strides = [1, 1, 1]} : vector<4x8x32xf32> to vector<1x8x32xf32>
    %167 = vector.shape_cast %166 : vector<1x8x32xf32> to vector<8x32xf32>
    %c0_80 = arith.constant 0 : index
    %c0_81 = arith.constant 0 : index
    %168 = vector.load %arg22[%c0_80, %c0_81] : memref<8x128xf32, #tpu.memory_space<vmem>>, vector<8x32xf32>
    tpu.vector_store %arg22[%c0_80, %c0_81], %167 {strides = array<i32>} : memref<8x128xf32, #tpu.memory_space<vmem>>, vector<8x32xf32>,
    %169 = vector.extract_strided_slice %165 {offsets = [1, 0, 0], sizes = [1, 8, 32], strides = [1, 1, 1]} : vector<4x8x32xf32> to vector<1x8x32xf32>
    %170 = vector.shape_cast %169 : vector<1x8x32xf32> to vector<8x32xf32>
    %c0_82 = arith.constant 0 : index
    %c32 = arith.constant 32 : index
    %171 = vector.load %arg22[%c0_82, %c32] : memref<8x128xf32, #tpu.memory_space<vmem>>, vector<8x32xf32>
    tpu.vector_store %arg22[%c0_82, %c32], %170 {strides = array<i32>} : memref<8x128xf32, #tpu.memory_space<vmem>>, vector<8x32xf32>,
    %172 = vector.extract_strided_slice %165 {offsets = [2, 0, 0], sizes = [1, 8, 32], strides = [1, 1, 1]} : vector<4x8x32xf32> to vector<1x8x32xf32>
    %173 = vector.shape_cast %172 : vector<1x8x32xf32> to vector<8x32xf32>
    %c0_83 = arith.constant 0 : index
    %c64 = arith.constant 64 : index
    %174 = vector.load %arg22[%c0_83, %c64] : memref<8x128xf32, #tpu.memory_space<vmem>>, vector<8x32xf32>
    tpu.vector_store %arg22[%c0_83, %c64], %173 {strides = array<i32>} : memref<8x128xf32, #tpu.memory_space<vmem>>, vector<8x32xf32>,
    %175 = vector.extract_strided_slice %165 {offsets = [3, 0, 0], sizes = [1, 8, 32], strides = [1, 1, 1]} : vector<4x8x32xf32> to vector<1x8x32xf32>
    %176 = vector.shape_cast %175 : vector<1x8x32xf32> to vector<8x32xf32>
    %c0_84 = arith.constant 0 : index
    %c96 = arith.constant 96 : index
    %177 = vector.load %arg22[%c0_84, %c96] : memref<8x128xf32, #tpu.memory_space<vmem>>, vector<8x32xf32>
    tpu.vector_store %arg22[%c0_84, %c96], %176 {strides = array<i32>} : memref<8x128xf32, #tpu.memory_space<vmem>>, vector<8x32xf32>,
    %c0_85 = arith.constant 0 : index
    %c0_86 = arith.constant 0 : index
    %178 = vector.load %arg22[%c0_85, %c0_86] : memref<8x128xf32, #tpu.memory_space<vmem>>, vector<8x128xf32>
    %179 = arith.truncf %178 : vector<8x128xf32> to vector<8x128xbf16>
    %c0_87 = arith.constant 0 : index
    %c0_88 = arith.constant 0 : index
    %180 = vector.load %arg10[%c0_87, %c0_88] : memref<128x128xbf16, #tpu.memory_space<vmem>>, vector<128x128xbf16>
    %cst_89 = arith.constant dense<0.000000e+00> : vector<8x128xf32>
    %181 = tpu.matmul %179, %180, %cst_89 {dimension_numbers = #tpu.dot_dimension_numbers<[1], [0], [0], [1], [0, 0, 1, 1], [], []>} : vector<8x128xbf16>, vector<128x128xbf16>, vector<8x128xf32> -> vector<8x128xf32>
    %c0_90 = arith.constant 0 : index
    %c0_91 = arith.constant 0 : index
    %182 = vector.load %arg11[%c0_90, %c0_91] : memref<1x128xf32, #tpu.memory_space<vmem>>, vector<1x128xf32>
    %183 = vector.shape_cast %182 : vector<1x128xf32> to vector<128xf32>
    %184 = vector.shape_cast %183 : vector<128xf32> to vector<1x128xf32>
    %185 = vector.broadcast %184 : vector<1x128xf32> to vector<8x128xf32>
    %186 = arith.addf %181, %185 : vector<8x128xf32>
    %187 = arith.addf %1, %186 : vector<8x128xf32>
    %cst_92 = arith.constant dense<0.000000e+00> : vector<8xf32>
    %188 = vector.multi_reduction <add>, %187, %cst_92 [1] : vector<8x128xf32> to vector<8xf32>
    %189 = vector.shape_cast %188 : vector<8xf32> to vector<8x1xf32>
    %cst_93 = arith.constant 1.280000e+02 : f32
    %190 = vector.broadcast %cst_93 : f32 to vector<8x1xf32>
    %191 = arith.divf %189, %190 : vector<8x1xf32>
    %192 = vector.broadcast %191 : vector<8x1xf32> to vector<8x128xf32>
    %193 = arith.subf %187, %192 : vector<8x128xf32>
    %194 = arith.mulf %193, %193 : vector<8x128xf32>
    %cst_94 = arith.constant dense<0.000000e+00> : vector<8xf32>
    %195 = vector.multi_reduction <add>, %194, %cst_94 [1] : vector<8x128xf32> to vector<8xf32>
    %196 = vector.shape_cast %195 : vector<8xf32> to vector<8x1xf32>
    %cst_95 = arith.constant 1.280000e+02 : f32
    %197 = vector.broadcast %cst_95 : f32 to vector<8x1xf32>
    %198 = arith.divf %196, %197 : vector<8x1xf32>
    %199 = vector.broadcast %191 : vector<8x1xf32> to vector<8x128xf32>
    %200 = arith.subf %187, %199 : vector<8x128xf32>
    %cst_96 = arith.constant 9.99999974E-6 : f32
    %201 = vector.broadcast %cst_96 : f32 to vector<8x1xf32>
    %202 = arith.addf %198, %201 : vector<8x1xf32>
    %203 = math.rsqrt %202 : vector<8x1xf32>
    %204 = vector.broadcast %203 : vector<8x1xf32> to vector<8x128xf32>
    %205 = arith.mulf %200, %204 : vector<8x128xf32>
    %c0_97 = arith.constant 0 : index
    %c0_98 = arith.constant 0 : index
    %206 = vector.load %arg12[%c0_97, %c0_98] : memref<1x128xf32, #tpu.memory_space<vmem>>, vector<1x128xf32>
    %207 = vector.shape_cast %206 : vector<1x128xf32> to vector<128xf32>
    %208 = vector.shape_cast %207 : vector<128xf32> to vector<1x128xf32>
    %209 = vector.broadcast %208 : vector<1x128xf32> to vector<8x128xf32>
    %210 = arith.mulf %205, %209 : vector<8x128xf32>
    %c0_99 = arith.constant 0 : index
    %c0_100 = arith.constant 0 : index
    %211 = vector.load %arg13[%c0_99, %c0_100] : memref<1x128xf32, #tpu.memory_space<vmem>>, vector<1x128xf32>
    %212 = vector.shape_cast %211 : vector<1x128xf32> to vector<128xf32>
    %213 = vector.shape_cast %212 : vector<128xf32> to vector<1x128xf32>
    %214 = vector.broadcast %213 : vector<1x128xf32> to vector<8x128xf32>
    %215 = arith.addf %210, %214 : vector<8x128xf32>
    %216 = arith.truncf %215 : vector<8x128xf32> to vector<8x128xbf16>
    %c0_101 = arith.constant 0 : index
    %c0_102 = arith.constant 0 : index
    %217 = vector.load %arg14[%c0_101, %c0_102] : memref<128x512xbf16, #tpu.memory_space<vmem>>, vector<128x512xbf16>
    %cst_103 = arith.constant dense<0.000000e+00> : vector<8x512xf32>
    %218 = tpu.matmul %216, %217, %cst_103 {dimension_numbers = #tpu.dot_dimension_numbers<[1], [0], [0], [1], [0, 0, 1, 1], [], []>} : vector<8x128xbf16>, vector<128x512xbf16>, vector<8x512xf32> -> vector<8x512xf32>
    %c0_104 = arith.constant 0 : index
    %c0_105 = arith.constant 0 : index
    %219 = vector.load %arg15[%c0_104, %c0_105] : memref<1x512xf32, #tpu.memory_space<vmem>>, vector<1x512xf32>
    %220 = vector.shape_cast %219 : vector<1x512xf32> to vector<512xf32>
    %221 = vector.shape_cast %220 : vector<512xf32> to vector<1x512xf32>
    %222 = vector.broadcast %221 : vector<1x512xf32> to vector<8x512xf32>
    %223 = arith.addf %218, %222 : vector<8x512xf32>
    %cst_106 = arith.constant 0.000000e+00 : f32
    %224 = vector.broadcast %cst_106 : f32 to vector<8x512xf32>
    %225 = arith.maximumf %223, %224 : vector<8x512xf32>
    %226 = arith.truncf %225 : vector<8x512xf32> to vector<8x512xbf16>
    %c0_107 = arith.constant 0 : index
    %c0_108 = arith.constant 0 : index
    %227 = vector.load %arg16[%c0_107, %c0_108] : memref<512x128xbf16, #tpu.memory_space<vmem>>, vector<512x128xbf16>
    %cst_109 = arith.constant dense<0.000000e+00> : vector<8x128xf32>
    %228 = tpu.matmul %226, %227, %cst_109 {dimension_numbers = #tpu.dot_dimension_numbers<[1], [0], [0], [1], [0, 0, 1, 1], [], []>} : vector<8x512xbf16>, vector<512x128xbf16>, vector<8x128xf32> -> vector<8x128xf32>
    %c0_110 = arith.constant 0 : index
    %c0_111 = arith.constant 0 : index
    %229 = vector.load %arg17[%c0_110, %c0_111] : memref<1x128xf32, #tpu.memory_space<vmem>>, vector<1x128xf32>
    %230 = vector.shape_cast %229 : vector<1x128xf32> to vector<128xf32>
    %231 = vector.shape_cast %230 : vector<128xf32> to vector<1x128xf32>
    %232 = vector.broadcast %231 : vector<1x128xf32> to vector<8x128xf32>
    %233 = arith.addf %228, %232 : vector<8x128xf32>
    %234 = arith.addf %187, %233 : vector<8x128xf32>
    %c0_112 = arith.constant 0 : index
    %c0_113 = arith.constant 0 : index
    %c0_114 = arith.constant 0 : index
    %235 = vector.load %arg18[%c0_112, %c0_113, %c0_114] : memref<1x8x128xf32, #tpu.memory_space<vmem>>, vector<1x8x128xf32>
    %236 = vector.shape_cast %235 : vector<1x8x128xf32> to vector<8x128xf32>
    %237 = vector.shape_cast %234 : vector<8x128xf32> to vector<1x8x128xf32>
    tpu.vector_store %arg18[%c0_112, %c0_113, %c0_114], %237 {strides = array<i32>} : memref<1x8x128xf32, #tpu.memory_space<vmem>>, vector<1x8x128xf32>,
    return
  }
  func.func @transform_0(%arg0: i32, %arg1: i32) -> (i32, i32, i32) {
    %c0_i32 = arith.constant 0 : i32
    %c0_i32_0 = arith.constant 0 : i32
    return %arg0, %arg1, %c0_i32 : i32, i32, i32
  }
  func.func @transform_1(%arg0: i32, %arg1: i32) -> (i32, i32, i32) {
    %c0_i32 = arith.constant 0 : i32
    %c0_i32_0 = arith.constant 0 : i32
    %c0_i32_1 = arith.constant 0 : i32
    return %arg0, %c0_i32, %c0_i32_0 : i32, i32, i32
  }
  func.func @transform_2(%arg0: i32, %arg1: i32) -> (i32, i32) {
    %c0_i32 = arith.constant 0 : i32
    %c0_i32_0 = arith.constant 0 : i32
    %c0_i32_1 = arith.constant 0 : i32
    return %c0_i32, %c0_i32_0 : i32, i32
  }
  func.func @transform_3(%arg0: i32, %arg1: i32) -> (i32, i32) {
    %c0_i32 = arith.constant 0 : i32
    %c0_i32_0 = arith.constant 0 : i32
    %c0_i32_1 = arith.constant 0 : i32
    return %c0_i32, %c0_i32_0 : i32, i32
  }
  func.func @transform_4(%arg0: i32, %arg1: i32) -> (i32, i32) {
    %c0_i32 = arith.constant 0 : i32
    %c0_i32_0 = arith.constant 0 : i32
    %c0_i32_1 = arith.constant 0 : i32
    return %c0_i32, %c0_i32_0 : i32, i32
  }
  func.func @transform_5(%arg0: i32, %arg1: i32) -> (i32, i32) {
    %c0_i32 = arith.constant 0 : i32
    %c0_i32_0 = arith.constant 0 : i32
    %c0_i32_1 = arith.constant 0 : i32
    return %c0_i32, %c0_i32_0 : i32, i32
  }
  func.func @transform_6(%arg0: i32, %arg1: i32) -> (i32, i32) {
    %c0_i32 = arith.constant 0 : i32
    %c0_i32_0 = arith.constant 0 : i32
    %c0_i32_1 = arith.constant 0 : i32
    return %c0_i32, %c0_i32_0 : i32, i32
  }
  func.func @transform_7(%arg0: i32, %arg1: i32) -> (i32, i32) {
    %c0_i32 = arith.constant 0 : i32
    %c0_i32_0 = arith.constant 0 : i32
    %c0_i32_1 = arith.constant 0 : i32
    return %c0_i32, %c0_i32_0 : i32, i32
  }
  func.func @transform_8(%arg0: i32, %arg1: i32) -> (i32, i32) {
    %c0_i32 = arith.constant 0 : i32
    %c0_i32_0 = arith.constant 0 : i32
    %c0_i32_1 = arith.constant 0 : i32
    return %c0_i32, %c0_i32_0 : i32, i32
  }
  func.func @transform_9(%arg0: i32, %arg1: i32) -> (i32, i32) {
    %c0_i32 = arith.constant 0 : i32
    %c0_i32_0 = arith.constant 0 : i32
    %c0_i32_1 = arith.constant 0 : i32
    return %c0_i32, %c0_i32_0 : i32, i32
  }
  func.func @transform_10(%arg0: i32, %arg1: i32) -> (i32, i32) {
    %c0_i32 = arith.constant 0 : i32
    %c0_i32_0 = arith.constant 0 : i32
    %c0_i32_1 = arith.constant 0 : i32
    return %c0_i32, %c0_i32_0 : i32, i32
  }
  func.func @transform_11(%arg0: i32, %arg1: i32) -> (i32, i32) {
    %c0_i32 = arith.constant 0 : i32
    %c0_i32_0 = arith.constant 0 : i32
    %c0_i32_1 = arith.constant 0 : i32
    return %c0_i32, %c0_i32_0 : i32, i32
  }
  func.func @transform_12(%arg0: i32, %arg1: i32) -> (i32, i32) {
    %c0_i32 = arith.constant 0 : i32
    %c0_i32_0 = arith.constant 0 : i32
    %c0_i32_1 = arith.constant 0 : i32
    return %c0_i32, %c0_i32_0 : i32, i32
  }
  func.func @transform_13(%arg0: i32, %arg1: i32) -> (i32, i32) {
    %c0_i32 = arith.constant 0 : i32
    %c0_i32_0 = arith.constant 0 : i32
    %c0_i32_1 = arith.constant 0 : i32
    return %c0_i32, %c0_i32_0 : i32, i32
  }
  func.func @transform_14(%arg0: i32, %arg1: i32) -> (i32, i32) {
    %c0_i32 = arith.constant 0 : i32
    %c0_i32_0 = arith.constant 0 : i32
    %c0_i32_1 = arith.constant 0 : i32
    return %c0_i32, %c0_i32_0 : i32, i32
  }
  func.func @transform_15(%arg0: i32, %arg1: i32) -> (i32, i32) {
    %c0_i32 = arith.constant 0 : i32
    %c0_i32_0 = arith.constant 0 : i32
    %c0_i32_1 = arith.constant 0 : i32
    return %c0_i32, %c0_i32_0 : i32, i32
  }
  func.func @transform_16(%arg0: i32, %arg1: i32) -> (i32, i32, i32) {
    %c0_i32 = arith.constant 0 : i32
    %c0_i32_0 = arith.constant 0 : i32
    return %arg0, %arg1, %c0_i32 : i32, i32, i32
  }
}

</mosaic_0001>

<bundles_post_ra>
// kernel: tpu_custom_call.1
= control target key start
LH: loop header
LB: loop body
LE: loop exit
PB: predicated region body
PF: predicated region fallthrough
CT: control target
= control target key end

     0   :  { %s3652_s0 = inlined_call_operand.hbm [shape: f32[2,8,128], index: 0, kind: input, shape index: {}]   ;;  %s3653_s1 = inlined_call_operand.hbm [shape: f32[2,8,128], index: 1, kind: input, shape index: {}]   ;;  %s3654_s2 = inlined_call_operand.vmem [shape: f32[1,128], index: 2, kind: input, shape index: {}]   ;;  %s3655_s3 = inlined_call_operand.hbm [shape: f32[1,128], index: 3, kind: input, shape index: {}]   ;;  %s3656_s4 = inlined_call_operand.hbm [shape: bf16[128,128], index: 4, kind: input, shape index: {}]   ;;  %s3657_s5 = inlined_call_operand.hbm [shape: f32[1,128], index: 5, kind: input, shape index: {}]   ;;  %s3658_s6 = inlined_call_operand.hbm [shape: bf16[128,256], index: 6, kind: input, shape index: {}]   ;;  %s3659_s7 = inlined_call_operand.vmem [shape: f32[1,256], index: 7, kind: input, shape index: {}]   ;;  %s3660_s8 = inlined_call_operand.hbm [shape: bf16[128,128], index: 8, kind: input, shape index: {}]   ;;  %s3661_s9 = inlined_call_operand.vmem [shape: f32[1,128], index: 9, kind: input, shape index: {}]   ;;  %s3662_s10 = inlined_call_operand.vmem [shape: f32[1,128], index: 10, kind: input, shape index: {}]   ;;  %s3663_s11 = inlined_call_operand.vmem [shape: f32[1,128], index: 11, kind: input, shape index: {}]   ;;  %s3664_s12 = inlined_call_operand.hbm [shape: bf16[128,512], index: 12, kind: input, shape index: {}]   ;;  %s3665_s13 = inlined_call_operand.vmem [shape: f32[1,512], index: 13, kind: input, shape index: {}]   ;;  %s3666_s14 = inlined_call_operand.hbm [shape: bf16[512,128], index: 14, kind: input, shape index: {}]   ;;  %s3667_s15 = inlined_call_operand.vmem [shape: f32[1,128], index: 15, kind: input, shape index: {}]   ;;  %s3668_s16 = inlined_call_operand.hbm [shape: f32[2,8,128], index: 16, kind: output, shape index: {}]  }
   0x1   :  { %3677 = sst [smem:[#allocation34_spill]] %s3652_s0 }
   0x2   :  { %3678 = sst [smem:[#allocation35_spill]] %s3655_s3 }
   0x3   :  { %3679 = sst [smem:[#allocation36_spill]] %s3656_s4 }
   0x4   :  { %3680 = sst [smem:[#allocation37_spill]] %s3657_s5 }
   0x5   :  { %3681 = sst [smem:[#allocation38_spill]] %s3658_s6 }
   0x6   :  { %3682 = sst [smem:[#allocation39_spill]] %s3660_s8 }
   0x7   :  { %3683 = sst [smem:[#allocation40_spill]] %s3662_s10 }
   0x8   :  { %3684 = sst [smem:[#allocation41_spill]] %s3663_s11 }
   0x9   :  { %3685 = sst [smem:[#allocation42_spill]] %s3664_s12 }
   0xa   :  { %3686 = sst [smem:[#allocation43_spill]] %s3665_s13 }
   0xb   :  { %3687 = sst [smem:[#allocation44_spill]] %s3666_s14 }
   0xc   :  { %3688 = sst [smem:[#allocation45_spill]] %s3667_s15 }
   0xd   :  { %3689 = sst [smem:[#allocation46_spill]] %s3668_s16 }
   0xe   :  { %21 = vsyncpa [#allocation7], 0 }
   0xf   :  { %23 = vsyncpa [#allocation7 + $0x1], 0 }
  0x10   :  { %24 = vsyncpa [#allocation10], 0 }
  0x11   :  { %26 = vsyncpa [#allocation10 + $0x1], 0 }
  0x12   :  { %27 = vsyncpa [#allocation13], 0 }
  0x13   :  { %28 = vsyncpa [#allocation16], 0 }
  0x14   :  { %29 = vsyncpa [#allocation19], 0 }
  0x15   :  { %30 = vsyncpa [#allocation8], 0 }
  0x16   :  { %32 = vsyncpa [#allocation8 + $0x1], 0  ;;  %s3329_s21 = smov 0   ;;  %s3331_s22 = smov 0  }
  0x17   :  { %s3333_s23 = smov 0   ;;  %s3335_s24 = smov 0  }
  0x18   :  { %s3337_s25 = smov 0   ;;  %s3339_s26 = smov 0  }
  0x19 LB: > { %3690 = sst [smem:[#allocation29_spill]] %s3212_s23  ;;  %s3360_s27 = sadd.s32 4294967295, %s3224_s26   ;;  %s3224_s26 = sphi %s3339_s26, %s38_s26   ;;  %s3220_s25 = sphi %s3337_s25, %s3720_s25   ;;  %s3216_s24 = sphi %s3335_s24, %s3719_s24   ;;  %s3212_s23 = sphi %s3333_s23, %s3718_s23   ;;  %s3208_s22 = sphi %s3331_s22, %s3722_s22   ;;  %s3204_s21 = sphi %s3329_s21, %s3721_s21  }
  0x1a   : > { %3691 = sst [smem:[#allocation30_spill]] %s3216_s24  ;;  %p2156_p0 = scmp.ge.s32.totalorder %s3224_s26, 1 }
  0x1b   : > { %3692 = sst [smem:[#allocation31_spill]] %s3220_s25  ;;  %p73_p1 = scmp.eq.s32.totalorder %s3360_s27, 0 }
  0x1c   : > { %p431_p2 = scmp.lt.s32.totalorder %s3224_s26, 3  ;;  %s3693_s3 = sld [smem:[#allocation35_spill]] }
  0x1d   : > { %p2164_p4 = scmp.ge.s32.totalorder %s3224_s26, 2  ;;  %s3226_s17 = smov [#allocation11]  }
  0x1e   : > { %p3368_p3 = pnand %p2156_p0, %p431_p2  ;;  %s448_s18 = sshll.u32 %s3226_s17, 4  ;;  %s449_s18 = int_to_ptr.vmem [resolvable:$true] %s448_s18 }
  0x1f   : > { %s3695_s4 = sld [smem:[#allocation36_spill]]  ;;  %s3227_s29 = smov [#allocation12]  }
  0x20   : > { %p2706_p5 = pneg %p3368_p3  ;;  %s3670_s17 = smov 64  }
  0x21   : > { %s3672_s15 = smov 4   ;;  %s3697_s6 = sld [smem:[#allocation38_spill]] }
  0x22   : > { %s446_s30 = sshll.u32 %s3693_s3, 4  ;;  %p3380_p6 = pnand %p2706_p5, %p73_p1  ;;  %s447_s30 = int_to_ptr.hbm [resolvable:$true] %s446_s30 }
  0x23   : > { %s459_s3 = sshll.u32 %s3227_s29, 4  ;;  %s3230_s24 = smov [#allocation15]   ;;  %s460_s3 = int_to_ptr.vmem [resolvable:$true] %s459_s3 }
  0x24   : > { %2709 = dma.hbm_to_vmem [thread:$0]  (!%p3380_p6), %s447_s30, 16, %s449_s18, [#allocation10]  }
  0x25   : > { %s457_s16 = sshll.u32 %s3695_s4, 4  ;;  %s485_s13 = sshll.u32 %s3230_s24, 4  ;;  %s458_s16 = int_to_ptr.hbm [resolvable:$true] %s457_s16  ;;  %s486_s13 = int_to_ptr.vmem [resolvable:$true] %s485_s13 }
  0x26   : > { %2712 = dma.hbm_to_vmem [thread:$0]  (!%p3380_p6), %s458_s16, 1024, %s460_s3, [#allocation13], %s3670_s17, %s3670_s17, %s3672_s15  }
  0x27   : > { %s483_s4 = sshll.u32 %s3697_s6, 4  ;;  %s3698_s12 = sld [smem:[#allocation42_spill]]  ;;  %s484_s4 = int_to_ptr.hbm [resolvable:$true] %s483_s4 }
  0x28   : > { %s3231_s18 = smov 128   ;;  %s3232_s10 = smov 8  }
  0x29   : > { %2718 = dma.hbm_to_vmem [thread:$0]  (!%p3380_p6), %s484_s4, 2048, %s486_s13, [#allocation16], %s3231_s18, %s3231_s18, %s3232_s10  }
  0x2a   : > { %s3233_s3 = smov [#allocation18]   ;;  %s3234_s19 = smov 256  }
  0x2b   : > { %s525_s16 = sshll.u32 %s3233_s3, 4  ;;  %s3235_s20 = smov 16   ;;  %s526_s16 = int_to_ptr.vmem [resolvable:$true] %s525_s16 }
  0x2c   : > { %s3699_s5 = sld [smem:[#allocation37_spill]]  ;;  %s3236_s11 = smov [#allocation14]  }
  0x2d   : > { %s523_s30 = sshll.u32 %s3698_s12, 4  ;;  %s474_s29 = sshll.u32 %s3236_s11, 4  ;;  %s524_s30 = int_to_ptr.hbm [resolvable:$true] %s523_s30  ;;  %s475_s29 = int_to_ptr.vmem [resolvable:$true] %s474_s29 }
  0x2e   : > { %2724 = dma.hbm_to_vmem [thread:$0]  (!%p3380_p6), %s524_s30, 4096, %s526_s16, [#allocation19], %s3234_s19, %s3234_s19, %s3235_s20  }
  0x2f   : > { %s3700_s8 = sld [smem:[#allocation39_spill]]  ;;  %s3237_s17 = smov [#allocation17]  }
  0x30   : > { %s502_s30 = sshll.u32 %s3237_s17, 4  ;;  %s3701_s14 = sld [smem:[#allocation44_spill]]  ;;  %s503_s30 = int_to_ptr.vmem [resolvable:$true] %s502_s30 }
  0x31   : > { %s3702_s19 = smov 4   ;;  %s3703_s20 = smov 64  }
  0x32   : > { %s472_s15 = sshll.u32 %s3699_s5, 4  ;;  %s2155_s11 = sadd.s32 4294967294, %s3224_s26   ;;  %s473_s15 = int_to_ptr.hbm [resolvable:$true] %s472_s15 }
  0x33   : > { %2715 = dma.hbm_to_vmem [thread:$0]  (!%p3380_p6), %s473_s15, 16, %s475_s29, [#allocation13]  }
  0x34   : > { %s3238_s15 = smov [#allocation20]   ;;  %s50_s29 = sadd.s32 1, %s3220_s25 }
  0x35   : > { %s500_s13 = sshll.u32 %s3700_s8, 4  ;;  %s542_s24 = sshll.u32 %s3238_s15, 4  ;;  %s501_s13 = int_to_ptr.hbm [resolvable:$true] %s500_s13  ;;  %s543_s24 = int_to_ptr.vmem [resolvable:$true] %s542_s24 }
  0x36   : > { %s540_s16 = sshll.u32 %s3701_s14, 4  ;;  %s59_s4 = sadd.s32 1, %s3212_s23  ;;  %s541_s16 = int_to_ptr.hbm [resolvable:$true] %s540_s16 }
  0x37   : > { %2721 = dma.hbm_to_vmem [thread:$0]  (!%p3380_p6), %s501_s13, 1024, %s503_s30, [#allocation16], %s3703_s20, %s3703_s20, %s3702_s19  }
  0x38   : > { %2727 = dma.hbm_to_vmem [thread:$0]  (!%p3380_p6), %s541_s16, 4096, %s543_s24, [#allocation19], %s3703_s20, %s3703_s20, %s3702_s19  }
  0x39   : > { %p52_p7 = scmp.ge.s32.totalorder %s50_s29, 2  ;;  %p66_p8 = scmp.ne.s32.totalorder %s3212_s23, %s3208_s22 }
  0x3a   : > { %p67_p9 = scmp.eq.s32.totalorder %s3224_s26, 0  ;;  %p72_p10 = scmp.ne.s32.totalorder %s3208_s22, %s3204_s21 }
  0x3b   : > { %s3724_s29 = smov (%p52_p7, %s50_s29), 0  ;;  %p418_p13 = scmp.eq.s32.totalorder %s3360_s27, 1 }
  0x3c   : > { %3704 = sst [smem:[#allocation32_spill]] %s3724_s29  ;;  %p3432_p11 = por %p67_p9, %p66_p8 }
  0x3d   : > { %p3438_p12 = por %p73_p1, %p72_p10  ;;  %s54_s13 = ssub.s32 %s3220_s25, %s3724_s29 }
  0x3e   : > { %p57_p0 = scmp.eq.s32.totalorder %s54_s13, 0  ;;  %p424_p2 = scmp.eq.s32.totalorder %s2155_s11, 1 }
  0x3f   : > { %p3445_p5 = por %p418_p13, %p66_p8  ;;  %p2746_p6 = scmp.lt.s32.totalorder %s3224_s26, 2 }
  0x40   : > { %s3451_s30 = scalar_select %p57_p0, %s3212_s23, %s59_s4  }
  0x41   : > { %p3453_p7 = por %p424_p2, %p72_p10  ;;  %s559_s3 = sand.u32 1, %s3212_s23  }
  0x42   : > { %3708 = sst [smem:[#allocation33_spill]] %s3451_s30  ;;  %s2165_s16 = sshll.u32 %s559_s3, 3 }
  0x43   : > { %s2166_s19 = sshll.u32 %s3220_s25, 3  ;;  %s3710_s24 = sld [smem:[#allocation34_spill]] }
  0x44   : > { %s563_s11 = scalar_lea.vmem [#allocation6], %s2165_s16  ;;  %p2729_p8 = pnand %p2746_p6, %p3432_p11 }
  0x45   : > { %s572_s5 = sshll.u32 %s563_s11, 4  ;;  %s587_s12 = scalar_lea.hbm %s3653_s1, %s2166_s19  ;;  %s573_s5 = int_to_ptr.vmem [resolvable:$true] %s572_s5 }
  0x46   : > { %s579_s14 = sand.u32 1, %s3224_s26   ;;  %s560_s29 = scalar_lea.sflag [#allocation7], %s559_s3 }
  0x47   : > { %s589_s30 = sshll.u32 %s587_s12, 4  ;;  %s583_s25 = scalar_lea.vmem [#allocation9], %s2165_s16  ;;  %s590_s30 = int_to_ptr.hbm [resolvable:$true] %s589_s30 }
  0x48   : > { %s591_s23 = sshll.u32 %s583_s25, 4  ;;  %s580_s20 = scalar_lea.sflag [#allocation10], %s579_s14  ;;  %s592_s23 = int_to_ptr.vmem [resolvable:$true] %s591_s23 }
  0x49   : > { %s568_s13 = scalar_lea.hbm %s3710_s24, %s2166_s19  ;;  %600 = sbr.rel (%p3368_p3) target bundleno = 1969 (0x7b1), region = 84 }
  0x4a   : > { %s570_s6 = sshll.u32 %s568_s13, 4  ;;  %s3471_s28 = sand.u32 (!%p3368_p3), 1, %s3208_s22   ;;  %s571_s6 = int_to_ptr.hbm [resolvable:$true] %s570_s6 }
  0x4b   : > { %2731 = dma.hbm_to_vmem [thread:$0]  (!%p2729_p8), %s571_s6, 128, %s573_s5, %s560_s29  }
  0x4c   : > { %2734 = dma.hbm_to_vmem [thread:$0]  (!%p2729_p8), %s590_s30, 128, %s592_s23, %s580_s20  }
  0x4d   : > { %s3474_s8 = sshll.u32 (!%p3368_p3), %s3471_s28, 3  ;;  %s603_s5 = scalar_lea.sflag (!%p3368_p3), [#allocation7], %s3471_s28 }
  0x4e   : > { %s606_s6 = scalar_lea.vmem [#allocation6], %s3474_s8 }
  0x4f   : > { %3175 = dma.done.wait (%p3438_p12), %s603_s5, 128  }
  0x50   : > { %3177 = vsyncadd (%p3438_p12), %s603_s5, 4294967168  ;;  %s612_s12 = sand.u32 1, %s3360_s27   ;;  %s616_s23 = scalar_lea.vmem [#allocation9], %s3474_s8 }
  0x51   : > { %s613_s14 = scalar_lea.sflag [#allocation10], %s612_s12 }
  0x52   : > { %3179 = dma.done.wait (%p3438_p12), %s613_s14, 128  }
  0x53   : > { %3181 = vsyncadd (%p3438_p12), %s613_s14, 4294967168 }
  0x54   : > { %3183 = dma.done.wait (%p73_p1), [#allocation10], 16  }
  0x55   : > { %3185 = vsyncadd (%p73_p1), [#allocation10], 4294967280 }
  0x56   : > { %3187 = dma.done.wait (%p73_p1), [#allocation13], 1040  }
  0x57   : > { %3189 = vsyncadd (%p73_p1), [#allocation13], 4294966256 }
  0x58   : > { %3191 = dma.done.wait (%p73_p1), [#allocation16], 3072  }
  0x59   : > { %3193 = vsyncadd (%p73_p1), [#allocation16], 4294964224 }
  0x5a   : > { %3195 = dma.done.wait (%p73_p1), [#allocation19], 8192  }
  0x5b   : > { %3197 = vsyncadd (%p73_p1), [#allocation19], 4294959104  ;;  %v708_v0 = vld [vmem:[%s616_s23] sm:$0xff]  ;;  %v3504_v1 = vld [vmem:[%s606_s6] sm:$0xff]  ;;  %v3239_v2 = vmov 128.0   ;;  %vm980_vm7 = vcmask 257024  }
  0x5c   : > { %746 = vadd.xlane.f32.xlu0 %v708_v0  ;;  %2828 = vrcp.f32 %v3239_v2  ;;  %v2270_v5 = vld [vmem:[#allocation15 + $0x70] sm:$0xf]  ;;  %v2599_v6 = vld [vmem:[#allocation15 + $0x74] sm:$0xf0]  ;;  %v2598_v7 = vld [vmem:[#allocation15 + $0x74] sm:$0xf] }
  0x5d   : > { %v2271_v8 = vor.u32 %v2599_v6, %v2270_v5  ;;  %v2272_v9 = vld [vmem:[#allocation15 + $0x78] sm:$0xf0]  ;;  %v2262_v23 = vld [vmem:[#allocation15 + $0x60] sm:$0xf]  ;;  %v2597_v24 = vld [vmem:[#allocation15 + $0x64] sm:$0xf0] }
  0x5e   : > { %v2275_v10 = vor.u32 %v2598_v7, %v2272_v9  ;;  %v2596_v25 = vld [vmem:[#allocation15 + $0x64] sm:$0xf]  ;;  %v2263_v26 = vor.u32 %v2597_v24, %v2262_v23  ;;  %v2264_v27 = vld [vmem:[#allocation15 + $0x68] sm:$0xf0]  ;;  %v2254_v29 = vld [vmem:[#allocation15 + $0x50] sm:$0xf] }
  0x5f   : > { %953 = vmatpush.bf16.msra.mxu1 %v2271_v8  ;;  %v2267_v28 = vor.u32 %v2596_v25, %v2264_v27  ;;  %v2595_v30 = vld [vmem:[#allocation15 + $0x54] sm:$0xf0]  ;;  %v2594_v31 = vld [vmem:[#allocation15 + $0x54] sm:$0xf]  ;;  %v2256_v34 = vld [vmem:[#allocation15 + $0x58] sm:$0xf0] }
  0x60   : > { %966 = vmatpush.bf16.msra.mxu2 %v2275_v10  ;;  %v2583_v32 = vld [vmem:[#allocation12 + $0x38] sm:$0xff]  ;;  %v2255_v33 = vor.u32 %v2595_v30, %v2254_v29  ;;  %v2259_v35 = vor.u32 %v2594_v31, %v2256_v34  ;;  %v2246_v36 = vld [vmem:[#allocation15 + $0x40] sm:$0xf]  ;;  %v2593_v37 = vld [vmem:[#allocation15 + $0x44] sm:$0xf0]  ;;  %s3240_s10 = smov 96  }
  0x61   : > { %837 = vmatpush.bf16.msra.mxu0 %v2583_v32  ;;  %v2592_v38 = vld [vmem:[#allocation15 + $0x44] sm:$0xf]  ;;  %v2582_v39 = vld [vmem:[#allocation12 + $0x30] sm:$0xff]  ;;  %v2247_v40 = vor.u32 %v2593_v37, %v2246_v36  ;;  %v2591_v44 = vld [vmem:[#allocation15 + $0x34] sm:$0xf0]  ;;  %s3241_s30 = smov 64  }
  0x62   : > { %v2829_v3 = vpop.eup %2828  ;;  %v2248_v41 = vld [vmem:[#allocation15 + $0x48] sm:$0xf0]  ;;  %v2238_v43 = vld [vmem:[#allocation15 + $0x30] sm:$0xf]  ;;  %v2590_v45 = vld [vmem:[#allocation15 + $0x34] sm:$0xf] }
  0x63   : > { %v712_v4 = vmul.f32 128.0, %v2829_v3  ;;  %vm716_vm0 = vweird.f32 %v2829_v3  ;;  %954 = vmatpush.bf16.msra.mxu1 %v2263_v26  ;;  %v2251_v42 = vor.u32 %v2592_v38, %v2248_v41  ;;  %v2581_v46 = vld [vmem:[#allocation12 + $0x28] sm:$0xff]  ;;  %v2239_v47 = vor.u32 %v2591_v44, %v2238_v43  ;;  %v2240_v48 = vld [vmem:[#allocation15 + $0x38] sm:$0xf0]  ;;  %v2230_v50 = vld [vmem:[#allocation15 + $0x20] sm:$0xf] }
  0x64   : > { %709 = vadd.xlane.f32.xlu0 %v3504_v1  ;;  %967 = vmatpush.bf16.msra.mxu2 %v2267_v28  ;;  %v2243_v49 = vor.u32 %v2590_v45, %v2240_v48  ;;  %v2589_v51 = vld [vmem:[#allocation15 + $0x24] sm:$0xf0]  ;;  %v2588_v52 = vld [vmem:[#allocation15 + $0x24] sm:$0xf]  ;;  %v2232_v55 = vld [vmem:[#allocation15 + $0x28] sm:$0xf0] }
  0x65   : > { %v713_v11 = vsub.f32 1.0, %v712_v4  ;;  %838 = vmatpush.bf16.msra.mxu0 %v2582_v39  ;;  %v2580_v53 = vld [vmem:[#allocation12 + $0x20] sm:$0xff]  ;;  %v2231_v54 = vor.u32 %v2589_v51, %v2230_v50  ;;  %v2235_v56 = vor.u32 %v2588_v52, %v2232_v55  ;;  %v2222_v57 = vld [vmem:[#allocation15 + $0x10] sm:$0xf]  ;;  %v2587_v58 = vld [vmem:[#allocation15 + $0x14] sm:$0xf0] }
  0x66   : > { %v2586_v59 = vld [vmem:[#allocation15 + $0x14] sm:$0xf]  ;;  %v2223_v61 = vor.u32 %v2587_v58, %v2222_v57  ;;  %v2224_v62 = vld [vmem:[#allocation15 + $0x18] sm:$0xf0]  ;;  %v2585_v2 = vld [vmem:[#allocation15 + $0x4] sm:$0xf0] }
  0x67   : > { %v714_v12 = vmul.f32 %v2829_v3, %v713_v11  ;;  %955 = vmatpush.bf16.msra.mxu1 %v2255_v33  ;;  %v2579_v60 = vld [vmem:[#allocation12 + $0x18] sm:$0xff]  ;;  %v2227_v63 = vor.u32 %v2586_v59, %v2224_v62  ;;  %v2578_v4 = vld [vmem:[#allocation12 + $0x10] sm:$0xff]  ;;  %v2577_v8 = vld [vmem:[#allocation12 + $0x8] sm:$0xff]  ;;  %vm1051_vm8 = vcmask 261120   ;;  %vm1184_vm9 = vcmask 1043456   ;;  %s3242_s3 = smov 32  }
  0x68   : > { %968 = vmatpush.bf16.msra.mxu2 %v2259_v35  ;;  %v2216_v6 = vld [vmem:[#allocation15 + $0x8] sm:$0xf0]  ;;  %v2576_v10 = vld [vmem:[#allocation12] sm:$0xff]  ;;  %v2822_v30 = vld [vmem:[#allocation11] ss:$0 sm:$0xff]  ;;  %vm1128_vm11 = vcmask 64512  }
  0x69   : > { %v715_v13 = vadd.f32 %v2829_v3, %v714_v12  ;;  %839 = vmatpush.bf16.msra.mxu0 %v2581_v46  ;;  %v2821_v27 = vld [vmem:[%s3654_s2] ss:$0 sm:$0xff]  ;;  %vm1263_vm12 = vcmask 523520   ;;  %vm1269_vm13 = vcmask 785920   ;;  %vm1275_vm14 = vcmask 1048320   ;;  %s3711_s13 = sld [smem:[#allocation40_spill]] }
  0x6a   : > { %s3712_s20 = sld [smem:[#allocation41_spill]]  ;;  %s705_s16 = scalar_lea.vmem [#allocation21], %s3474_s8 }
  0x6b   : > { %v3507_v14 = vsel %vm716_vm0, %v2829_v3, %v715_v13  ;;  %956 = vmatpush.bf16.msra.mxu1 %v2247_v40  ;;  %v2584_v3 = vld [vmem:[#allocation15 + $0x4] sm:$0xf]  ;;  %s3713_s12 = sld [smem:[#allocation43_spill]]  ;;  %s1982_s19 = sshll.u32 %s705_s16, 4  ;;  %s1983_s19 = int_to_ptr.vmem [resolvable:$true] %s1982_s19 }
  0x6c   : > { %969 = vmatpush.bf16.msra.mxu2 %v2251_v42  ;;  %v2219_v7 = vor.u32 %v2584_v3, %v2216_v6  ;;  %s3714_s14 = sld [smem:[#allocation30_spill]]  ;;  %s1969_s24 = scalar_lea.sflag [#allocation8], %s3471_s28 }
  0x6d   : > { %840 = vmatpush.bf16.msra.mxu0 %v2580_v53  ;;  %s3715_s27 = sld [smem:[#allocation45_spill]] }
  0x6f   : > { %957 = vmatpush.bf16.msra.mxu1 %v2239_v47 }
  0x70   : > { %970 = vmatpush.bf16.msra.mxu2 %v2243_v49 }
  0x71   : > { %841 = vmatpush.bf16.msra.mxu0 %v2579_v60 }
  0x72   : > { %s2573_s0 = sshll.u32 %s3714_s14, 3 }
  0x73   : > { %958 = vmatpush.bf16.msra.mxu1 %v2231_v54 }
  0x74   : > { %971 = vmatpush.bf16.msra.mxu2 %v2235_v56 }
  0x75   : > { %842 = vmatpush.bf16.msra.mxu0 %v2578_v4 }
  0x77   : > { %959 = vmatpush.bf16.msra.mxu1 %v2223_v61 }
  0x78   : > { %972 = vmatpush.bf16.msra.mxu2 %v2227_v63 }
  0x79   : > { %843 = vmatpush.bf16.msra.mxu0 %v2577_v8 }
  0x7c   : > { %973 = vmatpush.bf16.msra.mxu2 %v2219_v7 }
  0x7d   : > { %844 = vmatpush.bf16.msra.mxu0 %v2576_v10 }
  0xcf   : > { %v747_v15 = vpop.xlane.xlu0 %746 }
  0xd0   : > { %v748_v16 = vmul.f32 %v747_v15, %v3507_v14 }
  0xd2   : > { %v3510_v17 = vsub.f32 %v708_v0, %v748_v16  ;;  %v2214_v0 = vld [vmem:[#allocation15] sm:$0xf] }
  0xd3   : > { %v2215_v5 = vor.u32 %v2585_v2, %v2214_v0 }
  0xd4   : > { %v750_v18 = vmul.f32 %v3510_v17, %v3510_v17 }
  0xd5   : > { %960 = vmatpush.bf16.msra.mxu1 %v2215_v5 }
  0xd6   : > { %751 = vadd.xlane.f32.xlu1 %v750_v18 }
  0xd7   : > { %v710_v19 = vpop.xlane.xlu0 %709 }
  0xd8   : > { %v718_v20 = vmul.f32 %v3507_v14, %v710_v19 }
  0xda   : > { %v3516_v21 = vsub.f32 %v3504_v1, %v718_v20 }
  0xdc   : > { %v720_v22 = vmul.f32 %v3516_v21, %v3516_v21 }
  0xde   : > { %721 = vadd.xlane.f32.xlu1 %v720_v22 }
 0x149   : > { %v752_v9 = vpop.xlane.xlu1 %751 }
 0x14a   : > { %v753_v11 = vmul.f32 %v752_v9, %v3507_v14 }
 0x14c   : > { %v754_v12 = vadd.f32 1e-05, %v753_v11 }
 0x14e   : > { %2830 = vrsqrt.f32 %v754_v12  ;;  %vm761_vm2 = vweird.f32 %v754_v12 }
 0x151   : > { %v722_v13 = vpop.xlane.xlu1 %721 }
 0x152   : > { %v723_v15 = vmul.f32 %v722_v13, %v3507_v14 }
 0x154   : > { %v2831_v16 = vpop.eup %2830  ;;  %v724_v18 = vadd.f32 1e-05, %v723_v15  ;;  %v1042_v15 = vlaneseq }
 0x155   : > { %v756_v19 = vmul.f32 %v2831_v16, %v754_v12  ;;  %vm762_vm1 = vweird.f32 %v2831_v16 }
 0x156   : > { %2832 = vrsqrt.f32 %v724_v18  ;;  %vm763_vm3 = vmor %vm761_vm2, %vm762_vm1  ;;  %vm731_vm5 = vweird.f32 %v724_v18 }
 0x157   : > { %v757_v20 = vmul.f32 %v2831_v16, %v756_v19  ;;  %v3243_v19 = vmov -1e+30  }
 0x159   : > { %v758_v22 = vmul.f32 0.5, %v757_v20 }
 0x15b   : > { %v759_v23 = vsub.f32 1.5, %v758_v22 }
 0x15c   : > { %v2833_v24 = vpop.eup %2832 }
 0x15d   : > { %v760_v25 = vmul.f32 %v2831_v16, %v759_v23  ;;  %v726_v26 = vmul.f32 %v2833_v24, %v724_v18  ;;  %vm732_vm4 = vweird.f32 %v2833_v24  ;;  %v1048_v18 = vand.u32 127, %v1042_v15 }
 0x15e   : > { %vm733_vm6 = vmor %vm731_vm5, %vm732_vm4 }
 0x15f   : > { %v727_v28 = vmul.f32 %v2833_v24, %v726_v26  ;;  %v764_v29 = vsel %vm763_vm3, %v2831_v16, %v760_v25  ;;  %v1043_v16 = vshrl.u32 %v1042_v15, 7 }
 0x160   : > { %v765_v31 = vmul.f32 %v764_v29, %v3510_v17  ;;  %v867_v17 = vld [vmem:[%s3659_s7] sm:$0x3] }
 0x161   : > { %v728_v32 = vmul.f32 0.5, %v727_v28  ;;  %v869_v43 = vperm.slane %v867_v17, 0  ;;  %v870_v47 = vperm.slane %v867_v17, 1  ;;  %vm1049_vm10 = vcmp.le.s32.totalorder %v1048_v18, %v1043_v16 }
 0x162   : > { %v766_v33 = vmul.f32 %v2821_v27, %v765_v31  ;;  %v1050_v20 = vsel %vm1049_vm10, 0.0, %v3243_v19 }
 0x163   : > { %v729_v34 = vsub.f32 1.5, %v728_v32 }
 0x164   : > { %v767_v35 = vadd.f32 %v2822_v30, %v766_v33 }
 0x165   : > { %v730_v36 = vmul.f32 %v2833_v24, %v729_v34 }
 0x166   : > { %v850_v37 = vpack.c.bf16 %v767_v35, %v767_v35 }
 0x167   : > { %v734_v38 = vsel %vm733_vm6, %v2833_v24, %v730_v36 }
 0x168   : > { %961 = vmatmul.bf16.vlgmr.msra.gmra.mxu1 %v850_v37  ;;  %974 = vmatmul.bf16.vlgmr.msra.gmra.mxu2 %v850_v37  ;;  %v735_v39 = vmul.f32 %v734_v38, %v3516_v21  ;;  %v2823_v21 = vld [vmem:[#allocation14] ss:$0 sm:$0xff] }
 0x16a   : > { %v740_v40 = vmul.f32 %v2821_v27, %v735_v39 }
 0x16c   : > { %v745_v41 = vadd.f32 %v2822_v30, %v740_v40 }
 0x16e   : > { %v768_v42 = vpack.c.bf16 %v745_v41, %v745_v41 }
 0x170   : > { %845 = vmatmul.bf16.vlgmr.msra.gmra.mxu0 %v768_v42 }
 0x1e5   : > { %v962_v44 = vpop.f32.mrf.mxu1 }
 0x1e6   : > { %v963_v45 = vadd.f32 %v962_v44, %v869_v43 }
 0x1e8   : > { %v982_v46 = vpack.c.bf16 %v963_v45, %v963_v45 }
 0x1ea   : > { %983 = vst.msk [vmem:[#allocation3] sm:$0xf] %vm980_vm7, %v982_v46  ;;  %993 = vrot.lane.b32.xlu2 %v982_v46, %s3240_s10  ;;  %1009 = vrot.lane.b32.xlu0 %v982_v46, %s3241_s30 }
 0x1eb   : > { %v975_v48 = vpop.f32.mrf.mxu2 }
 0x1ec   : > { %v976_v49 = vadd.f32 %v975_v48, %v870_v47 }
 0x1ed   : > { %v846_v50 = vpop.f32.mrf.mxu0  ;;  %v964_v51 = vpop.f32.mrf.mxu1 }
 0x1ee   : > { %v3533_v52 = vpack.c.bf16 %v976_v49, %v976_v49  ;;  %v847_v53 = vadd.f32 %v2823_v21, %v846_v50 }
 0x1f0   : > { %985 = vst.msk [vmem:[#allocation4] sm:$0xf] %vm980_vm7, %v3533_v52  ;;  %v979_v54 = vpack.c.bf16 %v847_v53, %v847_v53 }
 0x1f1   : > { %v1038_v55 = vld [vmem:[#allocation3] sm:$0xf] }
 0x1f2   : > { %981 = vst.msk [vmem:[#allocation2] sm:$0xf] %vm980_vm7, %v979_v54  ;;  %1004 = vrot.lane.b32.xlu1 %v979_v54, %s3241_s30  ;;  %987 = vrot.lane.b32.xlu2 %v979_v54, %s3240_s10  ;;  %v1056_v56 = vsel %vm1051_vm8, %v1038_v55, 0 }
 0x1f3   : > { %v977_v57 = vpop.f32.mrf.mxu2  ;;  %1065 = vmatpush.bf16.xpose.msra.mxu3 %v1056_v56 }
 0x1f5   : > { %v848_v58 = vpop.f32.mrf.mxu0 }
 0x1f7   : > { %v1177_v59 = vld [vmem:[#allocation4] sm:$0xf] }
 0x1f8   : > { %v1186_v60 = vsel %vm1184_vm9, %v1177_v59, 0 }
 0x1f9   : > { %1195 = vmatpush.bf16.msrb.mxu2 %v1186_v60  ;;  %v1034_v61 = vld [vmem:[#allocation2] sm:$0xf] }
 0x1fa   : > { %1024 = vrot.lane.b32.xlu2 %v982_v46, %s3242_s3  ;;  %2276 = vmatmul.msk.bf16.vlgmr.msra.gmra.mxu3 %vm1051_vm8, %v1034_v61 }
 0x202   : > { %1019 = vrot.lane.b32.xlu2 %v979_v54, %s3242_s3 }
 0x244   : > { %v994_v62 = vpop.permute.xlu2 %993 }
 0x245   : > { %997 = vst.msk [vmem:[#allocation3 + $0x4] sm:$0xf] %vm980_vm7, %v994_v62 }
 0x24c   : > { %v988_v63 = vpop.permute.xlu2 %987  ;;  %v1039_v0 = vld [vmem:[#allocation3 + $0x4] sm:$0xf] }
 0x24d   : > { %991 = vst.msk [vmem:[#allocation2 + $0x4] sm:$0xf] %vm980_vm7, %v988_v63  ;;  %v1075_v2 = vsel %vm1051_vm8, %v1039_v0, 0 }
 0x24e   : > { %1084 = vmatpush.bf16.xpose.msrb.mxu3 %v1075_v2 }
 0x254   : > { %v1025_v3 = vpop.permute.xlu2 %1024  ;;  %v1035_v4 = vld [vmem:[#allocation2 + $0x4] sm:$0xf] }
 0x255   : > { %1028 = vst.msk [vmem:[#allocation3 + $0xc] sm:$0xf] %vm980_vm7, %v1025_v3  ;;  %2277 = vmatmul.msk.bf16.vlgmr.msrb.gmra.mxu3 %vm1051_vm8, %v1035_v4 }
 0x25c   : > { %v1020_v5 = vpop.permute.xlu2 %1019  ;;  %v1010_v6 = vpop.permute.xlu0 %1009  ;;  %v1041_v7 = vld [vmem:[#allocation3 + $0xc] sm:$0xf] }
 0x25d   : > { %1023 = vst.msk [vmem:[#allocation2 + $0xc] sm:$0xf] %vm980_vm7, %v1020_v5  ;;  %v1113_v8 = vsel %vm1051_vm8, %v1041_v7, 0 }
 0x25e   : > { %1013 = vst.msk [vmem:[#allocation3 + $0x8] sm:$0xf] %vm980_vm7, %v1010_v6  ;;  %1122 = vmatpush.bf16.xpose.msrb.mxu0 %v1113_v8 }
 0x264   : > { %v1005_v9 = vpop.permute.xlu1 %1004  ;;  %v1037_v10 = vld [vmem:[#allocation2 + $0xc] sm:$0xf] }
 0x265   : > { %1008 = vst.msk [vmem:[#allocation2 + $0x8] sm:$0xf] %vm980_vm7, %v1005_v9  ;;  %2279 = vmatmul.msk.bf16.vlgmr.msrb.gmra.mxu0 %vm1051_vm8, %v1037_v10  ;;  %v1040_v11 = vld [vmem:[#allocation3 + $0x8] sm:$0xf] }
 0x266   : > { %v1094_v12 = vsel %vm1051_vm8, %v1040_v11, 0 }
 0x267   : > { %1103 = vmatpush.bf16.xpose.msra.mxu3 %v1094_v12 }
 0x26c   : > { %v1036_v13 = vld [vmem:[#allocation2 + $0x8] sm:$0xf] }
 0x26e   : > { %2278 = vmatmul.msk.bf16.vlgmr.msra.gmra.mxu3 %vm1051_vm8, %v1036_v13 }
 0x27d   : > { %v1067_v22 = vpop.f32.mrf.mxu3 }
 0x27e   : > { %v1068_v23 = vadd.f32 %v1067_v22, %v1050_v20 }
 0x280   : > { %v1129_v24 = vsel %vm1128_vm11, %v1068_v23, -inf }
 0x281   : > { %1130 = vmax.xlane.f32.xlu2 %v1129_v24 }
 0x285   : > { %v1069_v25 = vpop.f32.mrf.mxu3 }
 0x2d8   : > { %v1086_v26 = vpop.f32.mrf.mxu3 }
 0x2d9   : > { %v1087_v27 = vadd.f32 %v1086_v26, %v1050_v20 }
 0x2db   : > { %v1132_v28 = vsel %vm1128_vm11, %v1087_v27, -inf }
 0x2dc   : > { %1133 = vmax.xlane.f32.xlu0 %v1132_v28 }
 0x2e0   : > { %v1088_v29 = vpop.f32.mrf.mxu3 }
 0x2e1   : > { %v2607_v29 = vld [vmem:[#allocation17 + $0x38] sm:$0xff] }
 0x2e2   : > { %v1124_v30 = vpop.f32.mrf.mxu0  ;;  %1347 = vmatpush.bf16.msrb.mxu1 %v2607_v29  ;;  %v2390_v29 = vld [vmem:[#allocation18 + $0x88] sm:$0xf] }
 0x2e3   : > { %v1125_v31 = vadd.f32 %v1124_v30, %v1050_v20  ;;  %v2606_v30 = vld [vmem:[#allocation17 + $0x30] sm:$0xff] }
 0x2e5   : > { %v1138_v32 = vsel %vm1128_vm11, %v1125_v31, -inf }
 0x2e6   : > { %1139 = vmax.xlane.f32.xlu2 %v1138_v32  ;;  %1348 = vmatpush.bf16.msrb.mxu1 %v2606_v30  ;;  %v2627_v30 = vld [vmem:[#allocation18 + $0x94] sm:$0xf0] }
 0x2ea   : > { %v1126_v33 = vpop.f32.mrf.mxu0 }
 0x2eb   : > { %v2604_v33 = vld [vmem:[#allocation17 + $0x20] sm:$0xff] }
 0x2f1   : > { %v1105_v34 = vpop.f32.mrf.mxu3 }
 0x2f2   : > { %v1106_v35 = vadd.f32 %v1105_v34, %v1050_v20  ;;  %v2603_v34 = vld [vmem:[#allocation17 + $0x18] sm:$0xff] }
 0x2f4   : > { %v1131_v36 = vpop.xlane.xlu2 %1130  ;;  %v1135_v37 = vsel %vm1128_vm11, %v1106_v35, -inf }
 0x2f5   : > { %v1141_v38 = vsub.f32 %v1068_v23, %v1131_v36  ;;  %1136 = vmax.xlane.f32.xlu1 %v1135_v37  ;;  %v2601_v36 = vld [vmem:[#allocation17 + $0x8] sm:$0xff]  ;;  %v2600_v37 = vld [vmem:[#allocation17] sm:$0xff] }
 0x2f7   : > { %v1145_v39 = vmul.f32 1.442695, %v1141_v38 }
 0x2f9   : > { %2834 = vpow2.f32 %v1145_v39  ;;  %v1107_v40 = vpop.f32.mrf.mxu3 }
 0x2fe   : > { %999 = vrot.lane.b32.xlu2 %v3533_v52, %s3240_s10 }
 0x2ff   : > { %v2835_v41 = vpop.eup %2834 }
 0x300   : > { %v1153_v42 = vsel %vm1128_vm11, %v2835_v41, 0.0 }
 0x301   : > { %1154 = vadd.xlane.f32.xlu0 %v1153_v42  ;;  %v2824_v42 = vld [vmem:[%s3661_s9] ss:$0 sm:$0xff] }
 0x315   : > { %1014 = vrot.lane.b32.xlu0 %v3533_v52, %s3241_s30 }
 0x34f   : > { %v1134_v17 = vpop.xlane.xlu0 %1133 }
 0x350   : > { %v1142_v43 = vsub.f32 %v1087_v27, %v1134_v17 }
 0x352   : > { %v1147_v44 = vmul.f32 1.442695, %v1142_v43 }
 0x354   : > { %2836 = vpow2.f32 %v1147_v44 }
 0x359   : > { %v1140_v45 = vpop.xlane.xlu2 %1139 }
 0x35a   : > { %v2837_v46 = vpop.eup %2836  ;;  %v1144_v47 = vsub.f32 %v1125_v31, %v1140_v45  ;;  %v2605_v31 = vld [vmem:[#allocation17 + $0x28] sm:$0xff] }
 0x35b   : > { %v1156_v21 = vsel %vm1128_vm11, %v2837_v46, 0.0  ;;  %1349 = vmatpush.bf16.msrb.mxu1 %v2605_v31 }
 0x35c   : > { %v1151_v48 = vmul.f32 1.442695, %v1144_v47  ;;  %1157 = vadd.xlane.f32.xlu1 %v1156_v21  ;;  %v2638_v47 = vld [vmem:[#allocation18 + $0xec] sm:$0xf0]  ;;  %v2636_v21 = vld [vmem:[#allocation18 + $0xe4] sm:$0xf] }
 0x35e   : > { %2838 = vpow2.f32 %v1151_v48 }
 0x35f   : > { %1350 = vmatpush.bf16.msrb.mxu1 %v2604_v33  ;;  %v2625_v33 = vld [vmem:[#allocation18 + $0x8c] sm:$0xf] }
 0x361   : > { %v1000_v49 = vpop.permute.xlu2 %999 }
 0x362   : > { %1003 = vst.msk [vmem:[#allocation4 + $0x4] sm:$0xf] %vm980_vm7, %v1000_v49  ;;  %v2432_v49 = vld [vmem:[#allocation18 + $0xf0] sm:$0xf0] }
 0x363   : > { %1351 = vmatpush.bf16.msrb.mxu1 %v2603_v34  ;;  %v2392_v34 = vld [vmem:[#allocation18 + $0x98] sm:$0xf0] }
 0x364   : > { %v2839_v50 = vpop.eup %2838 }
 0x365   : > { %v1162_v51 = vsel %vm1128_vm11, %v2839_v50, 0.0 }
 0x366   : > { %1163 = vadd.xlane.f32.xlu2 %v1162_v51  ;;  %v2639_v51 = vld [vmem:[#allocation18 + $0xf4] sm:$0xf0] }
 0x368   : > { %v1137_v53 = vpop.xlane.xlu1 %1136 }
 0x369   : > { %v1143_v54 = vsub.f32 %v1106_v35, %v1137_v53  ;;  %v1178_v55 = vld [vmem:[#allocation4 + $0x4] sm:$0xf]  ;;  %v2602_v35 = vld [vmem:[#allocation17 + $0x10] sm:$0xff]  ;;  %v2435_v53 = vor.u32 %v2636_v21, %v2432_v49  ;;  %v2350_v21 = vld [vmem:[#allocation18 + $0x40] sm:$0xf] }
 0x36a   : > { %v1205_v56 = vsel %vm1184_vm9, %v1178_v55, 0  ;;  %1352 = vmatpush.bf16.msrb.mxu1 %v2602_v35  ;;  %v2637_v55 = vld [vmem:[#allocation18 + $0xec] sm:$0xf]  ;;  %v2395_v35 = vor.u32 %v2625_v33, %v2392_v34  ;;  %v2616_v49 = vld [vmem:[#allocation18 + $0x44] sm:$0xf]  ;;  %v2654_v33 = vld [vmem:[#allocation20 + $0x70] sm:$0xff] }
 0x36b   : > { %v1149_v57 = vmul.f32 1.442695, %v1143_v54  ;;  %1214 = vmatpush.bf16.msra.mxu2 %v1205_v56  ;;  %v2440_v56 = vld [vmem:[#allocation18 + $0xf8] sm:$0xf0]  ;;  %v2661_v34 = vld [vmem:[#allocation20 + $0xa8] sm:$0xff] }
 0x36d   : > { %2840 = vpow2.f32 %v1149_v57  ;;  %v2443_v57 = vor.u32 %v2637_v55, %v2440_v56 }
 0x36e   : > { %1353 = vmatpush.bf16.msrb.mxu1 %v2601_v36  ;;  %v2366_v36 = vld [vmem:[#allocation18 + $0x60] sm:$0xf] }
 0x372   : > { %1354 = vmatpush.bf16.msrb.mxu1 %v2600_v37  ;;  %v2622_v37 = vld [vmem:[#allocation18 + $0x6c] sm:$0xf0] }
 0x373   : > { %v2841_v58 = vpop.eup %2840 }
 0x374   : > { %v1159_v59 = vsel %vm1128_vm11, %v2841_v58, 0.0  ;;  %v1155_v60 = vpop.xlane.xlu0 %1154 }
 0x375   : > { %1160 = vadd.xlane.f32.xlu1 %v1159_v59  ;;  %2842 = vrcp.f32 %v1155_v60 }
 0x376   : > { %1633 = vmatpush.bf16.msra.mxu1 %v2443_v57  ;;  %v2617_v57 = vld [vmem:[#allocation18 + $0x4c] sm:$0xf] }
 0x37b   : > { %v2843_v61 = vpop.eup %2842 }
 0x37c   : > { %v1169_v62 = vmul.f32 %v2843_v61, %v2835_v41  ;;  %v2414_v61 = vld [vmem:[#allocation18 + $0xc0] sm:$0xf] }
 0x37e   : > { %v1173_v63 = vpack.c.bf16 %v1169_v62, %v1169_v62  ;;  %v2634_v62 = vld [vmem:[#allocation18 + $0xcc] sm:$0xf0] }
 0x380   : > { %2280 = vmatmul.msk.bf16.vlgmr.msrb.gmra.mxu2 %vm1128_vm11, %v1173_v63  ;;  %v2632_v63 = vld [vmem:[#allocation18 + $0xc4] sm:$0xf] }
 0x387   : > { %v1015_v0 = vpop.permute.xlu0 %1014 }
 0x388   : > { %1018 = vst.msk [vmem:[#allocation4 + $0x8] sm:$0xf] %vm980_vm7, %v1015_v0  ;;  %v2415_v0 = vor.u32 %v2634_v62, %v2414_v61  ;;  %v2614_v61 = vld [vmem:[#allocation18 + $0x2c] sm:$0xf0]  ;;  %v2612_v62 = vld [vmem:[#allocation18 + $0x24] sm:$0xf] }
 0x38e   : > { %1029 = vrot.lane.b32.xlu1 %v3533_v52, %s3242_s3 }
 0x38f   : > { %v1179_v2 = vld [vmem:[#allocation4 + $0x8] sm:$0xf] }
 0x390   : > { %v1224_v3 = vsel %vm1184_vm9, %v1179_v2, 0  ;;  %v2416_v2 = vld [vmem:[#allocation18 + $0xd0] sm:$0xf0] }
 0x391   : > { %1233 = vmatpush.bf16.msrb.mxu3 %v1224_v3  ;;  %v2422_v3 = vld [vmem:[#allocation18 + $0xc8] sm:$0xf] }
 0x395   : > { %1607 = vmatpush.bf16.msra.mxu3 %v2435_v53  ;;  %v2358_v53 = vld [vmem:[#allocation18 + $0x48] sm:$0xf] }
 0x3cf   : > { %v1158_v4 = vpop.xlane.xlu1 %1157 }
 0x3d0   : > { %2844 = vrcp.f32 %v1158_v4  ;;  %v2635_v4 = vld [vmem:[#allocation18 + $0xd4] sm:$0xf0] }
 0x3d6   : > { %v2845_v5 = vpop.eup %2844 }
 0x3d7   : > { %v1170_v6 = vmul.f32 %v2845_v5, %v2837_v46  ;;  %v2430_v46 = vld [vmem:[#allocation18 + $0xe0] sm:$0xf]  ;;  %v2419_v5 = vor.u32 %v2632_v63, %v2416_v2  ;;  %v2342_v2 = vld [vmem:[#allocation18 + $0x28] sm:$0xf] }
 0x3d8   : > { %v2431_v48 = vor.u32 %v2638_v47, %v2430_v46  ;;  %v2376_v46 = vld [vmem:[#allocation18 + $0x78] sm:$0xf0] }
 0x3d9   : > { %v1174_v7 = vpack.c.bf16 %v1170_v6, %v1170_v6  ;;  %v1164_v12 = vpop.xlane.xlu2 %1163  ;;  %v2423_v6 = vor.u32 %v2635_v4, %v2422_v3  ;;  %1608 = vmatpush.bf16.msra.mxu3 %v2419_v5  ;;  %v2615_v3 = vld [vmem:[#allocation18 + $0x34] sm:$0xf0] }
 0x3da   : > { %1594 = vmatpush.bf16.msrb.mxu2 %v2431_v48  ;;  %v2618_v48 = vld [vmem:[#allocation18 + $0x4c] sm:$0xf0]  ;;  %v2343_v5 = vor.u32 %v2615_v3, %v2342_v2  ;;  %v2641_v2 = vld [vmem:[#allocation20 + $0x8] sm:$0xff] }
 0x3db   : > { %2281 = vmatmul.msk.bf16.vlgmr.msra.gmra.mxu2 %vm1128_vm11, %v1174_v7  ;;  %v2633_v7 = vld [vmem:[#allocation18 + $0xcc] sm:$0xf] }
 0x3dc   : > { %v2649_v3 = vld [vmem:[#allocation20 + $0x48] sm:$0xff] }
 0x3de   : > { %1595 = vmatpush.bf16.msrb.mxu2 %v2415_v0  ;;  %v2336_v0 = vld [vmem:[#allocation18 + $0x30] sm:$0xf0] }
 0x3df   : > { %v2339_v4 = vor.u32 %v2612_v62, %v2336_v0  ;;  %v2642_v62 = vld [vmem:[#allocation20 + $0x10] sm:$0xff]  ;;  %v2664_v0 = vld [vmem:[#allocation20 + $0xc0] sm:$0xff] }
 0x3e8   : > { %v1161_v8 = vpop.xlane.xlu1 %1160 }
 0x3e9   : > { %2846 = vrcp.f32 %v1161_v8  ;;  %v2424_v8 = vld [vmem:[#allocation18 + $0xd8] sm:$0xf0] }
 0x3ea   : > { %2848 = vrcp.f32 %v1164_v12  ;;  %v2628_v12 = vld [vmem:[#allocation18 + $0xa4] sm:$0xf] }
 0x3ef   : > { %v2847_v9 = vpop.eup %2846 }
 0x3f0   : > { %v1171_v10 = vmul.f32 %v2847_v9, %v2841_v58  ;;  %v2849_v15 = vpop.eup %2848  ;;  %v2427_v9 = vor.u32 %v2633_v7, %v2424_v8  ;;  %v2344_v7 = vld [vmem:[#allocation18 + $0x38] sm:$0xf0]  ;;  %v2318_v8 = vld [vmem:[#allocation18] sm:$0xf] }
 0x3f1   : > { %v1172_v16 = vmul.f32 %v2849_v15, %v2839_v50  ;;  %v2438_v50 = vld [vmem:[#allocation18 + $0xe8] sm:$0xf] }
 0x3f2   : > { %v1175_v11 = vpack.c.bf16 %v1171_v10, %v1171_v10  ;;  %v2439_v54 = vor.u32 %v2639_v51, %v2438_v50  ;;  %v2398_v10 = vld [vmem:[#allocation18 + $0xa0] sm:$0xf]  ;;  %1634 = vmatpush.bf16.msra.mxu1 %v2427_v9  ;;  %v2406_v15 = vld [vmem:[#allocation18 + $0xa8] sm:$0xf]  ;;  %v2351_v50 = vor.u32 %v2618_v48, %v2350_v21  ;;  %v2352_v51 = vld [vmem:[#allocation18 + $0x50] sm:$0xf0] }
 0x3f3   : > { %v1176_v20 = vpack.c.bf16 %v1172_v16, %v1172_v16  ;;  %v2631_v16 = vld [vmem:[#allocation18 + $0xb4] sm:$0xf0]  ;;  %v2355_v55 = vor.u32 %v2616_v49, %v2352_v51  ;;  %v2658_v49 = vld [vmem:[#allocation20 + $0x90] sm:$0xff] }
 0x3f4   : > { %2282 = vmatmul.msk.bf16.vlgmr.msrb.gmra.mxu3 %vm1128_vm11, %v1175_v11  ;;  %v2630_v11 = vld [vmem:[#allocation18 + $0xac] sm:$0xf0] }
 0x400   : > { %v1030_v52 = vpop.permute.xlu1 %1029 }
 0x401   : > { %1033 = vst.msk [vmem:[#allocation4 + $0xc] sm:$0xf] %vm980_vm7, %v1030_v52  ;;  %v2399_v52 = vor.u32 %v2630_v11, %v2398_v10  ;;  %v2610_v10 = vld [vmem:[#allocation18 + $0xc] sm:$0xf0]  ;;  %v2608_v11 = vld [vmem:[#allocation18 + $0x4] sm:$0xf] }
 0x403   : > { %v1197_v13 = vpop.f32.mrf.mxu2  ;;  %1596 = vmatpush.bf16.msrb.mxu2 %v2399_v52  ;;  %v2319_v52 = vor.u32 %v2610_v10, %v2318_v8 }
 0x404   : > { %1258 = vst.msk [vmem:[#allocation5] sm:$0xff] %vm1051_vm8, %v1197_v13  ;;  %v2400_v13 = vld [vmem:[#allocation18 + $0xb0] sm:$0xf0] }
 0x408   : > { %v1180_v18 = vld [vmem:[#allocation4 + $0xc] sm:$0xf] }
 0x409   : > { %v1243_v19 = vsel %vm1184_vm9, %v1180_v18, 0  ;;  %v2403_v18 = vor.u32 %v2628_v12, %v2400_v13  ;;  %v2320_v12 = vld [vmem:[#allocation18 + $0x10] sm:$0xf0] }
 0x40a   : > { %1252 = vmatpush.bf16.msra.mxu0 %v1243_v19  ;;  %v2407_v19 = vor.u32 %v2631_v16, %v2406_v15  ;;  %v2323_v13 = vor.u32 %v2608_v11, %v2320_v12  ;;  %v2326_v15 = vld [vmem:[#allocation18 + $0x8] sm:$0xf]  ;;  %v2611_v16 = vld [vmem:[#allocation18 + $0x14] sm:$0xf0] }
 0x40b   : > { %v1199_v22 = vpop.f32.mrf.mxu2  ;;  %1609 = vmatpush.bf16.msra.mxu3 %v2403_v18  ;;  %v2609_v18 = vld [vmem:[#allocation18 + $0xc] sm:$0xf] }
 0x40c   : > { %v2408_v22 = vld [vmem:[#allocation18 + $0xb8] sm:$0xf0] }
 0x40d   : > { %2283 = vmatmul.msk.bf16.vlgmr.msra.gmra.mxu0 %vm1128_vm11, %v1176_v20  ;;  %v2629_v20 = vld [vmem:[#allocation18 + $0xac] sm:$0xf] }
 0x40e   : > { %1620 = vmatpush.bf16.msrb.mxu0 %v2439_v54  ;;  %v2619_v54 = vld [vmem:[#allocation18 + $0x54] sm:$0xf0] }
 0x40f   : > { %v2359_v56 = vor.u32 %v2619_v54, %v2358_v53  ;;  %v2825_v53 = vld [vmem:[%s3711_s13] ss:$0 sm:$0xff] }
 0x412   : > { %1621 = vmatpush.bf16.msrb.mxu0 %v2423_v6  ;;  %v2613_v6 = vld [vmem:[#allocation18 + $0x2c] sm:$0xf] }
 0x413   : > { %v2347_v9 = vor.u32 %v2613_v6, %v2344_v7  ;;  %v1424_v6 = vld [vmem:[%s3713_s12] sm:$0xf] }
 0x414   : > { %v1428_v7 = vperm.slane %v1424_v6, 2  ;;  %v1429_v8 = vperm.slane %v1424_v6, 3 }
 0x416   : > { %1622 = vmatpush.bf16.msrb.mxu0 %v2407_v19  ;;  %v2327_v19 = vor.u32 %v2611_v16, %v2326_v15 }
 0x45e   : > { %v1216_v23 = vpop.f32.mrf.mxu2 }
 0x45f   : > { %1260 = vrot.lane.b32.xlu0 %v1216_v23, %s3242_s3  ;;  %v2411_v23 = vor.u32 %v2629_v20, %v2408_v22  ;;  %v2328_v20 = vld [vmem:[#allocation18 + $0x18] sm:$0xf0] }
 0x460   : > { %v2331_v22 = vor.u32 %v2609_v18, %v2328_v20 }
 0x461   : > { %1635 = vmatpush.bf16.msra.mxu1 %v2411_v23 }
 0x465   : > { %1636 = vmatpush.bf16.msra.mxu1 %v2395_v35  ;;  %v2669_v35 = vld [vmem:[#allocation20 + $0xe8] sm:$0xff] }
 0x466   : > { %v1218_v24 = vpop.f32.mrf.mxu2 }
 0x467   : > { %v2382_v24 = vld [vmem:[#allocation18 + $0x80] sm:$0xf] }
 0x477   : > { %v1235_v25 = vpop.f32.mrf.mxu3 }
 0x478   : > { %1266 = vrot.lane.b32.xlu0 %v1235_v25, %s3241_s30  ;;  %v2626_v25 = vld [vmem:[#allocation18 + $0x8c] sm:$0xf0]  ;;  %s3716_s30 = sld [smem:[#allocation46_spill]] }
 0x47e   : > { %s1980_s3 = scalar_lea.hbm %s3716_s30, %s2573_s0 }
 0x47f   : > { %v1237_v26 = vpop.f32.mrf.mxu3  ;;  %s1984_s15 = sshll.u32 %s1980_s3, 4  ;;  %s1985_s15 = int_to_ptr.hbm [resolvable:$true] %s1984_s15 }
 0x480   : > { %v2624_v26 = vld [vmem:[#allocation18 + $0x84] sm:$0xf]  ;;  %s3136_s13 = sshra.s32 %s1985_s15, 4  ;;  %s3137_s13 = int_to_ptr.hbm [resolvable:$true] %s3136_s13 }
 0x481   : > { %s3138_s11 = scalar_lea.hbm %s3137_s13, 8  ;;  %p3143_p10 = scmp.lt.s32.totalorder %s3137_s13, %s3716_s30 }
 0x482   : > { %p3139_p1 = scmp.ne.s32.totalorder %s3137_s13, %s3138_s11 }
 0x484   : > { %p3140_p3 = pnand %p3139_p1, %p3445_p5 }
 0x486   : > { %p3141_p9 = pneg %p3140_p3 }
 0x48a   : > { %v1254_v27 = vpop.f32.mrf.mxu0 }
 0x48b   : > { %1272 = vrot.lane.b32.xlu0 %v1254_v27, %s3240_s10  ;;  %v2383_v27 = vor.u32 %v2626_v25, %v2382_v24  ;;  %v2663_v24 = vld [vmem:[#allocation20 + $0xb8] sm:$0xff] }
 0x48c   : > { %v2671_v25 = vld [vmem:[#allocation20 + $0xf8] sm:$0xff] }
 0x48d   : > { %1597 = vmatpush.bf16.msrb.mxu2 %v2383_v27  ;;  %v2647_v27 = vld [vmem:[#allocation20 + $0x38] sm:$0xff] }
 0x492   : > { %v1256_v28 = vpop.f32.mrf.mxu0 }
 0x493   : > { %v2384_v28 = vld [vmem:[#allocation18 + $0x90] sm:$0xf0] }
 0x494   : > { %v2387_v31 = vor.u32 %v2624_v26, %v2384_v28  ;;  %v2655_v28 = vld [vmem:[#allocation20 + $0x78] sm:$0xff] }
 0x496   : > { %1610 = vmatpush.bf16.msra.mxu3 %v2387_v31 }
 0x4d1   : > { %v1261_v32 = vpop.permute.xlu0 %1260 }
 0x4d2   : > { %1264 = vst.msk [vmem:[#allocation5] sm:$0xff] %vm1263_vm12, %v1261_v32  ;;  %v2391_v32 = vor.u32 %v2627_v30, %v2390_v29  ;;  %v2662_v29 = vld [vmem:[#allocation20 + $0xb0] sm:$0xff] }
 0x4d3   : > { %v2670_v30 = vld [vmem:[#allocation20 + $0xf0] sm:$0xff] }
 0x4d4   : > { %1623 = vmatpush.bf16.msrb.mxu0 %v2391_v32  ;;  %v2646_v32 = vld [vmem:[#allocation20 + $0x30] sm:$0xff] }
 0x4ea   : > { %v1267_v38 = vpop.permute.xlu0 %1266 }
 0x4eb   : > { %1270 = vst.msk [vmem:[#allocation5] sm:$0xff] %vm1269_vm13, %v1267_v38  ;;  %v2620_v38 = vld [vmem:[#allocation18 + $0x64] sm:$0xf] }
 0x4fd   : > { %v1273_v39 = vpop.permute.xlu0 %1272 }
 0x4fe   : > { %1276 = vst.msk [vmem:[#allocation5] sm:$0xff] %vm1275_vm14, %v1273_v39  ;;  %v2367_v39 = vor.u32 %v2622_v37, %v2366_v36  ;;  %v2645_v36 = vld [vmem:[#allocation20 + $0x28] sm:$0xff]  ;;  %v2660_v37 = vld [vmem:[#allocation20 + $0xa0] sm:$0xff] }
 0x500   : > { %1598 = vmatpush.bf16.msrb.mxu2 %v2367_v39 }
 0x504   : > { %1599 = vmatpush.bf16.msrb.mxu2 %v2351_v50  ;;  %v2666_v50 = vld [vmem:[#allocation20 + $0xd0] sm:$0xff] }
 0x505   : > { %v1277_v40 = vld [vmem:[#allocation5] sm:$0xff] }
 0x506   : > { %v1278_v41 = vpack.c.bf16 %v1277_v40, %v1277_v40  ;;  %v2368_v40 = vld [vmem:[#allocation18 + $0x70] sm:$0xf0] }
 0x508   : > { %1355 = vmatmul.bf16.vlgmr.msrb.gmra.mxu1 %v1278_v41  ;;  %v2374_v41 = vld [vmem:[#allocation18 + $0x68] sm:$0xf] }
 0x585   : > { %v1356_v17 = vpop.f32.mrf.mxu1 }
 0x586   : > { %v1357_v43 = vadd.f32 %v2824_v42, %v1356_v17  ;;  %v2623_v42 = vld [vmem:[#allocation18 + $0x74] sm:$0xf0]  ;;  %v2371_v17 = vor.u32 %v2620_v38, %v2368_v40  ;;  %v2668_v38 = vld [vmem:[#allocation20 + $0xe0] sm:$0xff] }
 0x587   : > { %v2644_v40 = vld [vmem:[#allocation20 + $0x20] sm:$0xff] }
 0x588   : > { %v3589_v44 = vadd.f32 %v1357_v43, %v3504_v1  ;;  %v2375_v43 = vor.u32 %v2623_v42, %v2374_v41  ;;  %1611 = vmatpush.bf16.msra.mxu3 %v2371_v17  ;;  %v2652_v41 = vld [vmem:[#allocation20 + $0x60] sm:$0xff] }
 0x58a   : > { %1361 = vadd.xlane.f32.xlu1 %v3589_v44  ;;  %1624 = vmatpush.bf16.msrb.mxu0 %v2375_v43  ;;  %v2659_v43 = vld [vmem:[#allocation20 + $0x98] sm:$0xff] }
 0x58c   : > { %1612 = vmatpush.bf16.msra.mxu3 %v2355_v55 }
 0x58d   : > { %v1358_v45 = vpop.f32.mrf.mxu1 }
 0x58e   : > { %v2621_v45 = vld [vmem:[#allocation18 + $0x6c] sm:$0xf]  ;;  %1625 = vmatpush.bf16.msrb.mxu0 %v2359_v56  ;;  %v2826_v56 = vld [vmem:[%s3712_s20] ss:$0 sm:$0xff]  ;;  %s3142_s20 = scalar_lea.hbm %s3716_s30, 16 }
 0x58f   : > { %v2379_v47 = vor.u32 %v2621_v45, %v2376_v46  ;;  %v2667_v45 = vld [vmem:[#allocation20 + $0xd8] sm:$0xff]  ;;  %p3144_p11 = scmp.lt.s32.totalorder %s3142_s20, %s3138_s11 }
 0x590   : > { %1613 = vmatpush.bf16.msra.mxu3 %v2339_v4  ;;  %v2643_v46 = vld [vmem:[#allocation20 + $0x18] sm:$0xff]  ;;  %v2640_v4 = vld [vmem:[#allocation20] sm:$0xff] }
 0x591   : > { %1637 = vmatpush.bf16.msra.mxu1 %v2379_v47  ;;  %v2651_v47 = vld [vmem:[#allocation20 + $0x58] sm:$0xff]  ;;  %p3145_p12 = por %p3144_p11, %p3143_p10 }
 0x592   : > { %1626 = vmatpush.bf16.msrb.mxu0 %v2343_v5  ;;  %v2648_v5 = vld [vmem:[#allocation20 + $0x40] sm:$0xff] }
 0x593   : > { %p3146_p13 = pnand %p3145_p12, %p3141_p9 }
 0x594   : > { %1614 = vmatpush.bf16.msra.mxu3 %v2323_v13  ;;  %v1427_v13 = vperm.slane %v1424_v6, 1 }
 0x596   : > { %1627 = vmatpush.bf16.msrb.mxu0 %v2327_v19 }
 0x598   : > { %1927 = vmatpush.bf16.msrb.mxu3 %v2655_v28 }
 0x59a   : > { %1940 = vmatpush.bf16.msra.mxu0 %v2663_v24 }
 0x59c   : > { %1928 = vmatpush.bf16.msrb.mxu3 %v2654_v33 }
 0x59e   : > { %1941 = vmatpush.bf16.msra.mxu0 %v2662_v29 }
 0x5a2   : > { %1942 = vmatpush.bf16.msra.mxu0 %v2661_v34 }
 0x5a6   : > { %1943 = vmatpush.bf16.msra.mxu0 %v2660_v37 }
 0x5aa   : > { %1944 = vmatpush.bf16.msra.mxu0 %v2659_v43 }
 0x5ae   : > { %1945 = vmatpush.bf16.msra.mxu0 %v2658_v49 }
 0x5fd   : > { %v1362_v1 = vpop.xlane.xlu1 %1361 }
 0x5fe   : > { %v1363_v58 = vmul.f32 %v1362_v1, %v3507_v14  ;;  %v2360_v1 = vld [vmem:[#allocation18 + $0x58] sm:$0xf0] }
 0x600   : > { %v3594_v59 = vsub.f32 %v3589_v44, %v1363_v58  ;;  %v2363_v58 = vor.u32 %v2617_v57, %v2360_v1 }
 0x602   : > { %v1365_v60 = vmul.f32 %v3594_v59, %v3594_v59  ;;  %1638 = vmatpush.bf16.msra.mxu1 %v2363_v58 }
 0x604   : > { %1366 = vadd.xlane.f32.xlu0 %v1365_v60  ;;  %v2334_v60 = vld [vmem:[#allocation18 + $0x20] sm:$0xf] }
 0x605   : > { %v2335_v63 = vor.u32 %v2614_v61, %v2334_v60  ;;  %v2657_v60 = vld [vmem:[#allocation20 + $0x88] sm:$0xff] }
 0x606   : > { %1639 = vmatpush.bf16.msra.mxu1 %v2347_v9  ;;  %v2665_v61 = vld [vmem:[#allocation20 + $0xc8] sm:$0xff]  ;;  %1946 = vmatpush.bf16.msra.mxu0 %v2657_v60 }
 0x607   : > { %1600 = vmatpush.bf16.msrb.mxu2 %v2335_v63  ;;  %v2650_v63 = vld [vmem:[#allocation20 + $0x50] sm:$0xff] }
 0x60a   : > { %1640 = vmatpush.bf16.msra.mxu1 %v2331_v22 }
 0x60b   : > { %1601 = vmatpush.bf16.msrb.mxu2 %v2319_v52  ;;  %v1426_v52 = vperm.slane %v1424_v6, 0 }
 0x60e   : > { %1953 = vmatpush.bf16.msrb.mxu1 %v2671_v25 }
 0x60f   : > { %1914 = vmatpush.bf16.msra.mxu2 %v2647_v27 }
 0x612   : > { %1954 = vmatpush.bf16.msrb.mxu1 %v2670_v30 }
 0x613   : > { %1915 = vmatpush.bf16.msra.mxu2 %v2646_v32 }
 0x616   : > { %1955 = vmatpush.bf16.msrb.mxu1 %v2669_v35 }
 0x617   : > { %1916 = vmatpush.bf16.msra.mxu2 %v2645_v36 }
 0x61a   : > { %1956 = vmatpush.bf16.msrb.mxu1 %v2668_v38 }
 0x61b   : > { %1917 = vmatpush.bf16.msra.mxu2 %v2644_v40 }
 0x61e   : > { %1957 = vmatpush.bf16.msrb.mxu1 %v2667_v45 }
 0x61f   : > { %1918 = vmatpush.bf16.msra.mxu2 %v2643_v46 }
 0x622   : > { %1958 = vmatpush.bf16.msrb.mxu1 %v2666_v50 }
 0x623   : > { %1919 = vmatpush.bf16.msra.mxu2 %v2642_v62 }
 0x626   : > { %1959 = vmatpush.bf16.msrb.mxu1 %v2665_v61 }
 0x627   : > { %1920 = vmatpush.bf16.msra.mxu2 %v2641_v2 }
 0x62a   : > { %1960 = vmatpush.bf16.msrb.mxu1 %v2664_v0 }
 0x62b   : > { %1921 = vmatpush.bf16.msra.mxu2 %v2640_v4 }
 0x677   : > { %v1367_v23 = vpop.xlane.xlu0 %1366 }
 0x678   : > { %v1368_v26 = vmul.f32 %v1367_v23, %v3507_v14  ;;  %v2653_v14 = vld [vmem:[#allocation20 + $0x68] sm:$0xff] }
 0x679   : > { %1929 = vmatpush.bf16.msrb.mxu3 %v2653_v14  ;;  %v2827_v14 = vld [vmem:[%s3715_s27] ss:$0 sm:$0xff] }
 0x67a   : > { %v1369_v31 = vadd.f32 1e-05, %v1368_v26 }
 0x67c   : > { %2850 = vrsqrt.f32 %v1369_v31  ;;  %vm1376_vm0 = vweird.f32 %v1369_v31 }
 0x67d   : > { %1930 = vmatpush.bf16.msrb.mxu3 %v2652_v41 }
 0x681   : > { %1931 = vmatpush.bf16.msrb.mxu3 %v2651_v47 }
 0x682   : > { %v2851_v39 = vpop.eup %2850 }
 0x683   : > { %v1371_v42 = vmul.f32 %v2851_v39, %v1369_v31  ;;  %vm1377_vm15 = vweird.f32 %v2851_v39 }
 0x684   : > { %vm1378_vm1 = vmor %vm1376_vm0, %vm1377_vm15 }
 0x685   : > { %v1372_v17 = vmul.f32 %v2851_v39, %v1371_v42  ;;  %1932 = vmatpush.bf16.msrb.mxu3 %v2650_v63 }
 0x687   : > { %v1373_v21 = vmul.f32 0.5, %v1372_v17 }
 0x689   : > { %v1374_v48 = vsub.f32 1.5, %v1373_v21  ;;  %1933 = vmatpush.bf16.msrb.mxu3 %v2649_v3 }
 0x68b   : > { %v1375_v51 = vmul.f32 %v2851_v39, %v1374_v48 }
 0x68d   : > { %v1379_v54 = vsel %vm1378_vm1, %v2851_v39, %v1375_v51  ;;  %1934 = vmatpush.bf16.msrb.mxu3 %v2648_v5 }
 0x68e   : > { %v1380_v55 = vmul.f32 %v1379_v54, %v3594_v59  ;;  %v2656_v59 = vld [vmem:[#allocation20 + $0x80] sm:$0xff] }
 0x68f   : > { %1947 = vmatpush.bf16.msra.mxu0 %v2656_v59 }
 0x690   : > { %v1385_v57 = vmul.f32 %v2825_v53, %v1380_v55 }
 0x692   : > { %v1390_v1 = vadd.f32 %v2826_v56, %v1385_v57 }
 0x694   : > { %v1391_v58 = vpack.c.bf16 %v1390_v1, %v1390_v1 }
 0x696   : > { %1602 = vmatmul.bf16.vlgmr.msrb.gmra.mxu2 %v1391_v58  ;;  %1615 = vmatmul.bf16.vlgmr.msra.gmra.mxu3 %v1391_v58 }
 0x697   : > { %1628 = vmatmul.bf16.vlgmr.msrb.gmra.mxu0 %v1391_v58  ;;  %1641 = vmatmul.bf16.vlgmr.msra.gmra.mxu1 %v1391_v58 }
 0x714   : > { %v1629_v9 = vpop.f32.mrf.mxu0  ;;  %v1642_v10 = vpop.f32.mrf.mxu1 }
 0x715   : > { %v1630_v11 = vadd.f32 %v1629_v9, %v1428_v7  ;;  %v1643_v12 = vadd.f32 %v1642_v10, %v1429_v8 }
 0x717   : > { %v1648_v15 = vmax.f32 %v1630_v11, 0.0  ;;  %v1649_v16 = vmax.f32 %v1643_v12, 0.0 }
 0x719   : > { %v1652_v18 = vpack.c.bf16 %v1648_v15, %v1648_v15  ;;  %v1653_v19 = vpack.c.bf16 %v1649_v16, %v1649_v16  ;;  %v1603_v20 = vpop.f32.mrf.mxu2  ;;  %v1616_v22 = vpop.f32.mrf.mxu3 }
 0x71a   : > { %v1604_v23 = vadd.f32 %v1603_v20, %v1426_v52  ;;  %v1617_v24 = vadd.f32 %v1616_v22, %v1427_v13 }
 0x71b   : > { %1948 = vmatmul.bf16.vlgmr.msra.gmra.mxu0 %v1652_v18  ;;  %1961 = vmatmul.bf16.vlgmr.msrb.gmra.mxu1 %v1653_v19 }
 0x71c   : > { %v1646_v25 = vmax.f32 %v1604_v23, 0.0  ;;  %v1647_v26 = vmax.f32 %v1617_v24, 0.0  ;;  %v1631_v27 = vpop.f32.mrf.mxu0  ;;  %v1644_v28 = vpop.f32.mrf.mxu1 }
 0x71e   : > { %v1650_v29 = vpack.c.bf16 %v1646_v25, %v1646_v25  ;;  %v1651_v30 = vpack.c.bf16 %v1647_v26, %v1647_v26 }
 0x720   : > { %1922 = vmatmul.bf16.vlgmr.msra.gmra.mxu2 %v1650_v29  ;;  %1935 = vmatmul.bf16.vlgmr.msrb.gmra.mxu3 %v1651_v30 }
 0x721   : > { %v1605_v31 = vpop.f32.mrf.mxu2  ;;  %v1618_v32 = vpop.f32.mrf.mxu3 }
 0x798   : > { %v1949_v33 = vpop.f32.mrf.mxu0  ;;  %v1962_v34 = vpop.f32.mrf.mxu1 }
 0x7a0   : > { %v1951_v35 = vpop.f32.mrf.mxu0  ;;  %v1964_v36 = vpop.f32.mrf.mxu1 }
 0x7a3   : > { %v1923_v37 = vpop.f32.mrf.mxu2  ;;  %v1936_v38 = vpop.f32.mrf.mxu3 }
 0x7a4   : > { %v1924_v39 = vadd.f32 %v2827_v14, %v1923_v37 }
 0x7a6   : > { %v1937_v40 = vadd.f32 %v1936_v38, %v1924_v39 }
 0x7a8   : > { %v1950_v41 = vadd.f32 %v1949_v33, %v1937_v40 }
 0x7aa   : > { %v1963_v42 = vadd.f32 %v1962_v34, %v1950_v41 }
 0x7ab   : > { %v1925_v17 = vpop.f32.mrf.mxu2  ;;  %v1938_v43 = vpop.f32.mrf.mxu3 }
 0x7ac   : > { %v1966_v45 = vadd.f32 %v1963_v42, %v3589_v44 }
 0x7ae   : > { %1967 = vst [vmem:[%s705_s16] sm:$0xff] %v1966_v45 }
 0x7af   : > { %3149 = shalt.err (!%p3146_p13)
}
 0x7b0   : > { %2704 = dma.vmem_to_hbm [thread:$0]  (%p3445_p5), %s1983_s19, 128, %s1985_s15, %s1969_s24  }
 0x7b1 PF: > { %s1996_s28 = sand.u32 1, %s3204_s21   ;;  %p2736_p0 = pnand %p2164_p4, %p3453_p7 }
 0x7b2   : > { %s1997_s12 = scalar_lea.sflag [#allocation8], %s1996_s28 }
 0x7b3   : > { %p2737_p2 = pneg %p2736_p0 }
 0x7b5   : > { %3199 = dma.done.wait (%p2737_p2), %s1997_s12, 128  }
 0x7b6   : > { %3201 = vsyncadd (%p2737_p2), %s1997_s12, 4294967168  ;;  %s38_s26 = sadd.s32 1, %s3224_s26   ;;  %s3717_s14 = sld [smem:[#allocation29_spill]] }
 0x7b7   : > { %p35_p6 = scmp.ge.s32.totalorder %s38_s26, 4   ;;  %s3718_s23 = sld [smem:[#allocation33_spill]] }
 0x7b8   : > { %s3719_s24 = sld [smem:[#allocation31_spill]]  ;;  %s3721_s21 = smov %s3208_s22 }
 0x7b9   : > { %s3720_s25 = sld [smem:[#allocation32_spill]]  ;;  %37 = sbr.rel (!%p35_p6) target bundleno = 25 (0x19), region = 179 }
 0x7bc   : > { %s3722_s22 = smov %s3717_s14 }
 0x7be   :  { %2003 = vsyncpa [#allocation7], 1 }
 0x7bf   :  { %2005 = vsyncpa [#allocation7 + $0x1], 1 }
 0x7c0   :  { %2006 = vsyncpa [#allocation10], 1 }
 0x7c1   :  { %2008 = vsyncpa [#allocation10 + $0x1], 1 }
 0x7c2   :  { %2009 = vsyncpa [#allocation13], 1 }
 0x7c3   :  { %2010 = vsyncpa [#allocation16], 1 }
 0x7c4   :  { %2011 = vsyncpa [#allocation19], 1 }
 0x7c5   :  { %2012 = vsyncpa [#allocation8], 1 }
 0x7c6   :  { %2014 = vsyncpa [#allocation8 + $0x1], 1 }

</bundles_post_ra>
